<compile_context>
chip_gen: v7x
topology: tpu7x:2x2x1
jax: 0.10.0
libtpu: 0.0.40
codegen_flags: <defaults>
</compile_context>

<pallas_src>
import functools

import jax
import jax.numpy as jnp
from jax import lax
from jax.experimental import pallas as pl
from jax.experimental.pallas import tpu as pltpu

HIDDEN = 10
OUT = 2
LANES = 128            # batch samples per vreg lane row
CHUNK_ROWS = 64        # rows per register-resident inner chunk (8 vregs / array)
MAX_TILE_ROWS = 2048   # lane-major rows per grid step (2048*128 samples/step)
SMALL_BATCH = 16 * 1024  # below this, plain XLA beats kernel launch + plumbing


def _round_up(a, b):
    return pl.cdiv(a, b) * b


def _mlp_kernel(x_ref, w1_ref, b1_ref, w2_ref, b2_ref, o_ref):
    # x_ref:  (TILE_ROWS, LANES) f32 VMEM, batch is lane-major
    # w1_ref: (HIDDEN,)      f32 SMEM
    # b1_ref: (HIDDEN,)      f32 SMEM
    # w2_ref: (HIDDEN*OUT,)  f32 SMEM, row-major (k, j)
    # b2_ref: (OUT,)         f32 SMEM
    # o_ref:  (OUT, TILE_ROWS, LANES) f32 VMEM (lane-dense output slab)
    tile_rows = x_ref.shape[0]
    n_chunks = tile_rows // CHUNK_ROWS  # tile_rows is a multiple of CHUNK_ROWS

    # Hoist all SMEM scalar reads out of the chunk loop (sreg-resident).
    w1 = [w1_ref[k] for k in range(HIDDEN)]
    b1 = [b1_ref[k] for k in range(HIDDEN)]
    w2 = [[w2_ref[k * OUT + j] for j in range(OUT)] for k in range(HIDDEN)]
    b2 = [b2_ref[j] for j in range(OUT)]

    def chunk_body(c, carry):
        r = pl.multiple_of(c * CHUNK_ROWS, CHUNK_ROWS)
        x = x_ref[pl.ds(r, CHUNK_ROWS), :]
        # k = 0: fold b2 into the accumulator init (saves 2 full-tile broadcasts).
        h = jnp.maximum(x * w1[0] + b1[0], 0.0)
        out0 = h * w2[0][0] + b2[0]
        out1 = h * w2[0][1] + b2[1]
        # Unrolled over remaining hidden units: pure VPU FMAs + relu, no MXU.
        for k in range(1, HIDDEN):
            h = jnp.maximum(x * w1[k] + b1[k], 0.0)
            out0 = h * w2[k][0] + out0
            out1 = h * w2[k][1] + out1
        o_ref[0, pl.ds(r, CHUNK_ROWS), :] = out0
        o_ref[1, pl.ds(r, CHUNK_ROWS), :] = out1
        return carry

    lax.fori_loop(0, n_chunks, chunk_body, 0)


def _pallas_forward(x, w1, b1, w2, b2):
    """Pallas path. Returns lane-major output (OUT, N)."""
    n = x.shape[0]
    xf = jnp.asarray(x, jnp.float32).reshape(-1)  # (N,)

    # Lane-major packing: sample i -> (row i // 128, lane i % 128).
    rows = pl.cdiv(n, LANES)
    grid_steps = max(1, pl.cdiv(rows, MAX_TILE_ROWS))
    if grid_steps < 2 and rows >= 2 * CHUNK_ROWS:
        grid_steps = 2  # give v7x's second TensorCore a block to chew on
    tile_rows = max(CHUNK_ROWS, _round_up(pl.cdiv(rows, grid_steps), CHUNK_ROWS))
    rows_padded = grid_steps * tile_rows
    total = rows_padded * LANES

    if total != n:
        xf = jnp.pad(xf, (0, total - n))
    x2 = xf.reshape(rows_padded, LANES)

    w1f = jnp.asarray(w1, jnp.float32).reshape(-1)   # (HIDDEN,)
    b1f = jnp.asarray(b1, jnp.float32).reshape(-1)   # (HIDDEN,)
    w2f = jnp.asarray(w2, jnp.float32).reshape(-1)   # (HIDDEN*OUT,), (k, j) order
    b2f = jnp.asarray(b2, jnp.float32).reshape(-1)   # (OUT,)

    smem_spec = pl.BlockSpec(memory_space=pltpu.MemorySpace.SMEM)

    out = pl.pallas_call(
        _mlp_kernel,
        out_shape=jax.ShapeDtypeStruct((OUT, rows_padded, LANES), jnp.float32),
        grid_spec=pltpu.PrefetchScalarGridSpec(
            num_scalar_prefetch=0,
            grid=(grid_steps,),
            in_specs=[
                pl.BlockSpec((tile_rows, LANES), lambda i: (i, 0)),  # x tile (VMEM)
                smem_spec,  # w1
                smem_spec,  # b1
                smem_spec,  # w2
                smem_spec,  # b2
            ],
            out_specs=pl.BlockSpec((OUT, tile_rows, LANES), lambda i: (0, i, 0)),
        ),
        compiler_params=pltpu.CompilerParams(
            dimension_semantics=("parallel",),
        ),
    )(x2, w1f, b1f, w2f, b2f)

    # (OUT, rows_padded, LANES) -> (OUT, N) lane-major; reshape is a bitcast.
    return out.reshape(OUT, total)[:, :n]


def reference_forward(x, w1, b1, w2, b2):
    h = jnp.maximum(jnp.asarray(x, jnp.float32) @ w1 + b1, 0.0)
    return h @ w2 + b2


@functools.partial(jax.jit, static_argnames=("force_pallas", "lane_major_out"))
def model_ags_forward(x, w1, b1, w2, b2, *, force_pallas=False, lane_major_out=False):
    """x: (N, 1) f32 -> (N, 2) f32 (or (2, N) if lane_major_out=True).

    w1: (1, HIDDEN), b1: (HIDDEN,), w2: (HIDDEN, OUT), b2: (OUT,)
    (weights stored transposed vs torch so the math is relu(x@w1+b1)@w2+b2).
    """
    n = x.shape[0]
    if (not force_pallas) and n < SMALL_BATCH:
        # Tiny-batch fast path: kernel launch + pad/slice plumbing would dominate.
        y = reference_forward(x, w1, b1, w2, b2)
        return y.T if lane_major_out else y
    y_lm = _pallas_forward(x, w1, b1, w2, b2)       # (OUT, N), no transpose pass
    if lane_major_out:
        return y_lm                                  # avoids an extra HBM pass
    return y_lm.T                                    # (N, OUT) matches torch layout


def init_params(key):
    """Deterministic init mimicking nn.Linear (uniform(-1/sqrt(fan_in), +))."""
    k1, k2, k3, k4 = jax.random.split(key, 4)
    bound1 = 1.0  # fan_in = 1
    w1 = jax.random.uniform(k1, (1, HIDDEN), jnp.float32, -bound1, bound1)
    b1 = jax.random.uniform(k2, (HIDDEN,), jnp.float32, -bound1, bound1)
    bound2 = 1.0 / jnp.sqrt(float(HIDDEN))
    w2 = jax.random.uniform(k3, (HIDDEN, OUT), jnp.float32, -bound2, bound2)
    b2 = jax.random.uniform(k4, (OUT,), jnp.float32, -bound2, bound2)
    return w1, b1, w2, b2


if __name__ == "__main__":
    key = jax.random.PRNGKey(0)
    kx, kp = jax.random.split(key)

    w1, b1, w2, b2 = init_params(kp)

    # Small demo batch of "scaled AGS" scalar samples (MinMax-scaled-like, in [0,1)).
    N = 16
    x = jax.random.uniform(kx, (N, 1), jnp.float32)

    # Force the Pallas path so the kernel itself is exercised at small shapes.
    out = jax.block_until_ready(
        model_ags_forward(x, w1, b1, w2, b2, force_pallas=True))
    ref = reference_forward(x, w1, b1, w2, b2)
    assert out.shape == (N, OUT)
    assert jnp.allclose(out, ref, atol=1e-5, rtol=1e-5), "mismatch vs JAX reference"

    # Non-multiple-of-128 batch exercises lane padding / ragged unpadding.
    x2 = jax.random.uniform(jax.random.PRNGKey(1), (1000, 1), jnp.float32)
    out2 = jax.block_until_ready(
        model_ags_forward(x2, w1, b1, w2, b2, force_pallas=True))
    ref2 = reference_forward(x2, w1, b1, w2, b2)
    assert out2.shape == (1000, OUT)
    assert jnp.allclose(out2, ref2, atol=1e-5, rtol=1e-5), "mismatch vs JAX reference"

    # Lane-major output path (no post-kernel transpose pass).
    out2_lm = jax.block_until_ready(
        model_ags_forward(x2, w1, b1, w2, b2, force_pallas=True, lane_major_out=True))
    assert out2_lm.shape == (OUT, 1000)
    assert jnp.allclose(out2_lm.T, ref2, atol=1e-5, rtol=1e-5)

    # Auto-dispatch small-batch fast path (pure XLA) agrees as well.
    out_auto = jax.block_until_ready(model_ags_forward(x, w1, b1, w2, b2))
    assert jnp.allclose(out_auto, ref, atol=1e-5, rtol=1e-5)

    print("KERNEL_OK")
</pallas_src>

<mosaic_0001>
module attributes {stable_mosaic.version = 11 : i64} {
  func.func @_mlp_kernel(%arg0: i32, %arg1: memref<64x128xf32, #tpu.memory_space<vmem>>, %arg2: memref<10xf32, #tpu.memory_space<smem>>, %arg3: memref<10xf32, #tpu.memory_space<smem>>, %arg4: memref<20xf32, #tpu.memory_space<smem>>, %arg5: memref<2xf32, #tpu.memory_space<smem>>, %arg6: memref<2x64x128xf32, #tpu.memory_space<vmem>>) attributes {dimension_semantics = [#tpu.dimension_semantics<parallel>], iteration_bounds = array<i64: 1>, scalar_prefetch = 0 : i64, scratch_operands = 0 : i64, tpu.core_type = #tpu.core_type<tc>, window_params = [{transform_indices = @transform_0, window_bounds = array<i64: 64, 128>}, {transform_indices = @transform_1, window_bounds = array<i64: 10>}, {transform_indices = @transform_2, window_bounds = array<i64: 10>}, {transform_indices = @transform_3, window_bounds = array<i64: 20>}, {transform_indices = @transform_4, window_bounds = array<i64: 2>}, {transform_indices = @transform_5, window_bounds = array<i64: 2, 64, 128>}]} {
    %c0 = arith.constant 0 : index
    %0 = memref.load %arg2[%c0] : memref<10xf32, #tpu.memory_space<smem>>
    %c1 = arith.constant 1 : index
    %1 = memref.load %arg2[%c1] : memref<10xf32, #tpu.memory_space<smem>>
    %c2 = arith.constant 2 : index
    %2 = memref.load %arg2[%c2] : memref<10xf32, #tpu.memory_space<smem>>
    %c3 = arith.constant 3 : index
    %3 = memref.load %arg2[%c3] : memref<10xf32, #tpu.memory_space<smem>>
    %c4 = arith.constant 4 : index
    %4 = memref.load %arg2[%c4] : memref<10xf32, #tpu.memory_space<smem>>
    %c5 = arith.constant 5 : index
    %5 = memref.load %arg2[%c5] : memref<10xf32, #tpu.memory_space<smem>>
    %c6 = arith.constant 6 : index
    %6 = memref.load %arg2[%c6] : memref<10xf32, #tpu.memory_space<smem>>
    %c7 = arith.constant 7 : index
    %7 = memref.load %arg2[%c7] : memref<10xf32, #tpu.memory_space<smem>>
    %c8 = arith.constant 8 : index
    %8 = memref.load %arg2[%c8] : memref<10xf32, #tpu.memory_space<smem>>
    %c9 = arith.constant 9 : index
    %9 = memref.load %arg2[%c9] : memref<10xf32, #tpu.memory_space<smem>>
    %c0_0 = arith.constant 0 : index
    %10 = memref.load %arg3[%c0_0] : memref<10xf32, #tpu.memory_space<smem>>
    %c1_1 = arith.constant 1 : index
    %11 = memref.load %arg3[%c1_1] : memref<10xf32, #tpu.memory_space<smem>>
    %c2_2 = arith.constant 2 : index
    %12 = memref.load %arg3[%c2_2] : memref<10xf32, #tpu.memory_space<smem>>
    %c3_3 = arith.constant 3 : index
    %13 = memref.load %arg3[%c3_3] : memref<10xf32, #tpu.memory_space<smem>>
    %c4_4 = arith.constant 4 : index
    %14 = memref.load %arg3[%c4_4] : memref<10xf32, #tpu.memory_space<smem>>
    %c5_5 = arith.constant 5 : index
    %15 = memref.load %arg3[%c5_5] : memref<10xf32, #tpu.memory_space<smem>>
    %c6_6 = arith.constant 6 : index
    %16 = memref.load %arg3[%c6_6] : memref<10xf32, #tpu.memory_space<smem>>
    %c7_7 = arith.constant 7 : index
    %17 = memref.load %arg3[%c7_7] : memref<10xf32, #tpu.memory_space<smem>>
    %c8_8 = arith.constant 8 : index
    %18 = memref.load %arg3[%c8_8] : memref<10xf32, #tpu.memory_space<smem>>
    %c9_9 = arith.constant 9 : index
    %19 = memref.load %arg3[%c9_9] : memref<10xf32, #tpu.memory_space<smem>>
    %c0_10 = arith.constant 0 : index
    %20 = memref.load %arg4[%c0_10] : memref<20xf32, #tpu.memory_space<smem>>
    %c1_11 = arith.constant 1 : index
    %21 = memref.load %arg4[%c1_11] : memref<20xf32, #tpu.memory_space<smem>>
    %c2_12 = arith.constant 2 : index
    %22 = memref.load %arg4[%c2_12] : memref<20xf32, #tpu.memory_space<smem>>
    %c3_13 = arith.constant 3 : index
    %23 = memref.load %arg4[%c3_13] : memref<20xf32, #tpu.memory_space<smem>>
    %c4_14 = arith.constant 4 : index
    %24 = memref.load %arg4[%c4_14] : memref<20xf32, #tpu.memory_space<smem>>
    %c5_15 = arith.constant 5 : index
    %25 = memref.load %arg4[%c5_15] : memref<20xf32, #tpu.memory_space<smem>>
    %c6_16 = arith.constant 6 : index
    %26 = memref.load %arg4[%c6_16] : memref<20xf32, #tpu.memory_space<smem>>
    %c7_17 = arith.constant 7 : index
    %27 = memref.load %arg4[%c7_17] : memref<20xf32, #tpu.memory_space<smem>>
    %c8_18 = arith.constant 8 : index
    %28 = memref.load %arg4[%c8_18] : memref<20xf32, #tpu.memory_space<smem>>
    %c9_19 = arith.constant 9 : index
    %29 = memref.load %arg4[%c9_19] : memref<20xf32, #tpu.memory_space<smem>>
    %c10 = arith.constant 10 : index
    %30 = memref.load %arg4[%c10] : memref<20xf32, #tpu.memory_space<smem>>
    %c11 = arith.constant 11 : index
    %31 = memref.load %arg4[%c11] : memref<20xf32, #tpu.memory_space<smem>>
    %c12 = arith.constant 12 : index
    %32 = memref.load %arg4[%c12] : memref<20xf32, #tpu.memory_space<smem>>
    %c13 = arith.constant 13 : index
    %33 = memref.load %arg4[%c13] : memref<20xf32, #tpu.memory_space<smem>>
    %c14 = arith.constant 14 : index
    %34 = memref.load %arg4[%c14] : memref<20xf32, #tpu.memory_space<smem>>
    %c15 = arith.constant 15 : index
    %35 = memref.load %arg4[%c15] : memref<20xf32, #tpu.memory_space<smem>>
    %c16 = arith.constant 16 : index
    %36 = memref.load %arg4[%c16] : memref<20xf32, #tpu.memory_space<smem>>
    %c17 = arith.constant 17 : index
    %37 = memref.load %arg4[%c17] : memref<20xf32, #tpu.memory_space<smem>>
    %c18 = arith.constant 18 : index
    %38 = memref.load %arg4[%c18] : memref<20xf32, #tpu.memory_space<smem>>
    %c19 = arith.constant 19 : index
    %39 = memref.load %arg4[%c19] : memref<20xf32, #tpu.memory_space<smem>>
    %c0_20 = arith.constant 0 : index
    %40 = memref.load %arg5[%c0_20] : memref<2xf32, #tpu.memory_space<smem>>
    %c1_21 = arith.constant 1 : index
    %41 = memref.load %arg5[%c1_21] : memref<2xf32, #tpu.memory_space<smem>>
    %c0_i32 = arith.constant 0 : i32
    %c64_i32 = arith.constant 64 : i32
    %42 = arith.muli %c0_i32, %c64_i32 : i32
    %43 = tpu.assume_multiple %42, 64 : i32
    %44 = arith.index_cast %43 : i32 to index
    %c0_22 = arith.constant 0 : index
    %45 = vector.load %arg1[%44, %c0_22] : memref<64x128xf32, #tpu.memory_space<vmem>>, vector<64x128xf32>
    %46 = vector.broadcast %0 : f32 to vector<64x128xf32>
    %47 = arith.mulf %45, %46 : vector<64x128xf32>
    %48 = vector.broadcast %10 : f32 to vector<64x128xf32>
    %49 = arith.addf %47, %48 : vector<64x128xf32>
    %cst = arith.constant 0.000000e+00 : f32
    %50 = vector.broadcast %cst : f32 to vector<64x128xf32>
    %51 = arith.maximumf %49, %50 : vector<64x128xf32>
    %52 = vector.broadcast %20 : f32 to vector<64x128xf32>
    %53 = arith.mulf %51, %52 : vector<64x128xf32>
    %54 = vector.broadcast %40 : f32 to vector<64x128xf32>
    %55 = arith.addf %53, %54 : vector<64x128xf32>
    %56 = vector.broadcast %21 : f32 to vector<64x128xf32>
    %57 = arith.mulf %51, %56 : vector<64x128xf32>
    %58 = vector.broadcast %41 : f32 to vector<64x128xf32>
    %59 = arith.addf %57, %58 : vector<64x128xf32>
    %60 = vector.broadcast %1 : f32 to vector<64x128xf32>
    %61 = arith.mulf %45, %60 : vector<64x128xf32>
    %62 = vector.broadcast %11 : f32 to vector<64x128xf32>
    %63 = arith.addf %61, %62 : vector<64x128xf32>
    %cst_23 = arith.constant 0.000000e+00 : f32
    %64 = vector.broadcast %cst_23 : f32 to vector<64x128xf32>
    %65 = arith.maximumf %63, %64 : vector<64x128xf32>
    %66 = vector.broadcast %22 : f32 to vector<64x128xf32>
    %67 = arith.mulf %65, %66 : vector<64x128xf32>
    %68 = arith.addf %67, %55 : vector<64x128xf32>
    %69 = vector.broadcast %23 : f32 to vector<64x128xf32>
    %70 = arith.mulf %65, %69 : vector<64x128xf32>
    %71 = arith.addf %70, %59 : vector<64x128xf32>
    %72 = vector.broadcast %2 : f32 to vector<64x128xf32>
    %73 = arith.mulf %45, %72 : vector<64x128xf32>
    %74 = vector.broadcast %12 : f32 to vector<64x128xf32>
    %75 = arith.addf %73, %74 : vector<64x128xf32>
    %cst_24 = arith.constant 0.000000e+00 : f32
    %76 = vector.broadcast %cst_24 : f32 to vector<64x128xf32>
    %77 = arith.maximumf %75, %76 : vector<64x128xf32>
    %78 = vector.broadcast %24 : f32 to vector<64x128xf32>
    %79 = arith.mulf %77, %78 : vector<64x128xf32>
    %80 = arith.addf %79, %68 : vector<64x128xf32>
    %81 = vector.broadcast %25 : f32 to vector<64x128xf32>
    %82 = arith.mulf %77, %81 : vector<64x128xf32>
    %83 = arith.addf %82, %71 : vector<64x128xf32>
    %84 = vector.broadcast %3 : f32 to vector<64x128xf32>
    %85 = arith.mulf %45, %84 : vector<64x128xf32>
    %86 = vector.broadcast %13 : f32 to vector<64x128xf32>
    %87 = arith.addf %85, %86 : vector<64x128xf32>
    %cst_25 = arith.constant 0.000000e+00 : f32
    %88 = vector.broadcast %cst_25 : f32 to vector<64x128xf32>
    %89 = arith.maximumf %87, %88 : vector<64x128xf32>
    %90 = vector.broadcast %26 : f32 to vector<64x128xf32>
    %91 = arith.mulf %89, %90 : vector<64x128xf32>
    %92 = arith.addf %91, %80 : vector<64x128xf32>
    %93 = vector.broadcast %27 : f32 to vector<64x128xf32>
    %94 = arith.mulf %89, %93 : vector<64x128xf32>
    %95 = arith.addf %94, %83 : vector<64x128xf32>
    %96 = vector.broadcast %4 : f32 to vector<64x128xf32>
    %97 = arith.mulf %45, %96 : vector<64x128xf32>
    %98 = vector.broadcast %14 : f32 to vector<64x128xf32>
    %99 = arith.addf %97, %98 : vector<64x128xf32>
    %cst_26 = arith.constant 0.000000e+00 : f32
    %100 = vector.broadcast %cst_26 : f32 to vector<64x128xf32>
    %101 = arith.maximumf %99, %100 : vector<64x128xf32>
    %102 = vector.broadcast %28 : f32 to vector<64x128xf32>
    %103 = arith.mulf %101, %102 : vector<64x128xf32>
    %104 = arith.addf %103, %92 : vector<64x128xf32>
    %105 = vector.broadcast %29 : f32 to vector<64x128xf32>
    %106 = arith.mulf %101, %105 : vector<64x128xf32>
    %107 = arith.addf %106, %95 : vector<64x128xf32>
    %108 = vector.broadcast %5 : f32 to vector<64x128xf32>
    %109 = arith.mulf %45, %108 : vector<64x128xf32>
    %110 = vector.broadcast %15 : f32 to vector<64x128xf32>
    %111 = arith.addf %109, %110 : vector<64x128xf32>
    %cst_27 = arith.constant 0.000000e+00 : f32
    %112 = vector.broadcast %cst_27 : f32 to vector<64x128xf32>
    %113 = arith.maximumf %111, %112 : vector<64x128xf32>
    %114 = vector.broadcast %30 : f32 to vector<64x128xf32>
    %115 = arith.mulf %113, %114 : vector<64x128xf32>
    %116 = arith.addf %115, %104 : vector<64x128xf32>
    %117 = vector.broadcast %31 : f32 to vector<64x128xf32>
    %118 = arith.mulf %113, %117 : vector<64x128xf32>
    %119 = arith.addf %118, %107 : vector<64x128xf32>
    %120 = vector.broadcast %6 : f32 to vector<64x128xf32>
    %121 = arith.mulf %45, %120 : vector<64x128xf32>
    %122 = vector.broadcast %16 : f32 to vector<64x128xf32>
    %123 = arith.addf %121, %122 : vector<64x128xf32>
    %cst_28 = arith.constant 0.000000e+00 : f32
    %124 = vector.broadcast %cst_28 : f32 to vector<64x128xf32>
    %125 = arith.maximumf %123, %124 : vector<64x128xf32>
    %126 = vector.broadcast %32 : f32 to vector<64x128xf32>
    %127 = arith.mulf %125, %126 : vector<64x128xf32>
    %128 = arith.addf %127, %116 : vector<64x128xf32>
    %129 = vector.broadcast %33 : f32 to vector<64x128xf32>
    %130 = arith.mulf %125, %129 : vector<64x128xf32>
    %131 = arith.addf %130, %119 : vector<64x128xf32>
    %132 = vector.broadcast %7 : f32 to vector<64x128xf32>
    %133 = arith.mulf %45, %132 : vector<64x128xf32>
    %134 = vector.broadcast %17 : f32 to vector<64x128xf32>
    %135 = arith.addf %133, %134 : vector<64x128xf32>
    %cst_29 = arith.constant 0.000000e+00 : f32
    %136 = vector.broadcast %cst_29 : f32 to vector<64x128xf32>
    %137 = arith.maximumf %135, %136 : vector<64x128xf32>
    %138 = vector.broadcast %34 : f32 to vector<64x128xf32>
    %139 = arith.mulf %137, %138 : vector<64x128xf32>
    %140 = arith.addf %139, %128 : vector<64x128xf32>
    %141 = vector.broadcast %35 : f32 to vector<64x128xf32>
    %142 = arith.mulf %137, %141 : vector<64x128xf32>
    %143 = arith.addf %142, %131 : vector<64x128xf32>
    %144 = vector.broadcast %8 : f32 to vector<64x128xf32>
    %145 = arith.mulf %45, %144 : vector<64x128xf32>
    %146 = vector.broadcast %18 : f32 to vector<64x128xf32>
    %147 = arith.addf %145, %146 : vector<64x128xf32>
    %cst_30 = arith.constant 0.000000e+00 : f32
    %148 = vector.broadcast %cst_30 : f32 to vector<64x128xf32>
    %149 = arith.maximumf %147, %148 : vector<64x128xf32>
    %150 = vector.broadcast %36 : f32 to vector<64x128xf32>
    %151 = arith.mulf %149, %150 : vector<64x128xf32>
    %152 = arith.addf %151, %140 : vector<64x128xf32>
    %153 = vector.broadcast %37 : f32 to vector<64x128xf32>
    %154 = arith.mulf %149, %153 : vector<64x128xf32>
    %155 = arith.addf %154, %143 : vector<64x128xf32>
    %156 = vector.broadcast %9 : f32 to vector<64x128xf32>
    %157 = arith.mulf %45, %156 : vector<64x128xf32>
    %158 = vector.broadcast %19 : f32 to vector<64x128xf32>
    %159 = arith.addf %157, %158 : vector<64x128xf32>
    %cst_31 = arith.constant 0.000000e+00 : f32
    %160 = vector.broadcast %cst_31 : f32 to vector<64x128xf32>
    %161 = arith.maximumf %159, %160 : vector<64x128xf32>
    %162 = vector.broadcast %38 : f32 to vector<64x128xf32>
    %163 = arith.mulf %161, %162 : vector<64x128xf32>
    %164 = arith.addf %163, %152 : vector<64x128xf32>
    %165 = vector.broadcast %39 : f32 to vector<64x128xf32>
    %166 = arith.mulf %161, %165 : vector<64x128xf32>
    %167 = arith.addf %166, %155 : vector<64x128xf32>
    %c0_32 = arith.constant 0 : index
    %168 = arith.index_cast %43 : i32 to index
    %c0_33 = arith.constant 0 : index
    %169 = vector.load %arg6[%c0_32, %168, %c0_33] : memref<2x64x128xf32, #tpu.memory_space<vmem>>, vector<1x64x128xf32>
    %170 = vector.shape_cast %169 : vector<1x64x128xf32> to vector<64x128xf32>
    %171 = vector.shape_cast %164 : vector<64x128xf32> to vector<1x64x128xf32>
    tpu.vector_store %arg6[%c0_32, %168, %c0_33], %171 {strides = array<i32>} : memref<2x64x128xf32, #tpu.memory_space<vmem>>, vector<1x64x128xf32>,
    %c1_34 = arith.constant 1 : index
    %172 = arith.index_cast %43 : i32 to index
    %c0_35 = arith.constant 0 : index
    %173 = vector.load %arg6[%c1_34, %172, %c0_35] : memref<2x64x128xf32, #tpu.memory_space<vmem>>, vector<1x64x128xf32>
    %174 = vector.shape_cast %173 : vector<1x64x128xf32> to vector<64x128xf32>
    %175 = vector.shape_cast %167 : vector<64x128xf32> to vector<1x64x128xf32>
    tpu.vector_store %arg6[%c1_34, %172, %c0_35], %175 {strides = array<i32>} : memref<2x64x128xf32, #tpu.memory_space<vmem>>, vector<1x64x128xf32>,
    %c1_i32 = arith.constant 1 : i32
    return
  }
  func.func @transform_0(%arg0: i32) -> (i32, i32) {
    %c0_i32 = arith.constant 0 : i32
    %c0_i32_0 = arith.constant 0 : i32
    return %arg0, %c0_i32 : i32, i32
  }
  func.func @transform_1(%arg0: i32) -> i32 {
    %c0_i32 = arith.constant 0 : i32
    %c0_i32_0 = arith.constant 0 : i32
    return %c0_i32 : i32
  }
  func.func @transform_2(%arg0: i32) -> i32 {
    %c0_i32 = arith.constant 0 : i32
    %c0_i32_0 = arith.constant 0 : i32
    return %c0_i32 : i32
  }
  func.func @transform_3(%arg0: i32) -> i32 {
    %c0_i32 = arith.constant 0 : i32
    %c0_i32_0 = arith.constant 0 : i32
    return %c0_i32 : i32
  }
  func.func @transform_4(%arg0: i32) -> i32 {
    %c0_i32 = arith.constant 0 : i32
    %c0_i32_0 = arith.constant 0 : i32
    return %c0_i32 : i32
  }
  func.func @transform_5(%arg0: i32) -> (i32, i32, i32) {
    %c0_i32 = arith.constant 0 : i32
    %c0_i32_0 = arith.constant 0 : i32
    %c0_i32_1 = arith.constant 0 : i32
    return %c0_i32, %arg0, %c0_i32_0 : i32, i32, i32
  }
}

</mosaic_0001>

<bundles_post_ra>
// kernel: model_ags_forward.1
= control target key start
LH: loop header
LB: loop body
LE: loop exit
PB: predicated region body
PF: predicated region fallthrough
CT: control target
= control target key end

     0   :  { %10 = vsyncpa [#allocation3], 0  ;;  %s2053_s0 = inlined_call_operand.vmem [shape: f32[64,128], index: 0, kind: input, shape index: {}]   ;;  %s2054_s1 = inlined_call_operand.vmem [shape: f32[10], index: 1, kind: input, shape index: {}]   ;;  %s2055_s2 = inlined_call_operand.vmem [shape: f32[10], index: 2, kind: input, shape index: {}]   ;;  %s2056_s3 = inlined_call_operand.vmem [shape: f32[20], index: 3, kind: input, shape index: {}]   ;;  %s2057_s4 = inlined_call_operand.vmem [shape: f32[2], index: 4, kind: input, shape index: {}]   ;;  %s2058_s5 = inlined_call_operand.vmem [shape: f32[2,64,128], index: 5, kind: output, shape index: {}]  }
   0x1   :  { %11 = vsyncpa [#allocation5], 0  ;;  %s31_s20 = sshll.u32 %s2055_s2, 4  ;;  %s32_s20 = int_to_ptr.vmem [resolvable:$true] %s31_s20 }
   0x2   :  { %12 = vsyncpa [#allocation8], 0  ;;  %s21_s23 = sshll.u32 %s2054_s1, 4  ;;  %s796_s24 = scalar_lea.vmem %s32_s20, 16  ;;  %s22_s23 = int_to_ptr.vmem [resolvable:$true] %s21_s23 }
   0x3   :  { %p797_p0 = scmp.ne.s32.totalorder %s32_s20, %s796_s24  ;;  %p801_p1 = scmp.lt.s32.totalorder %s32_s20, %s32_s20 }
   0x4   :  { %p802_p2 = scmp.lt.s32.totalorder %s796_s24, %s796_s24 }
   0x6   :  { %p803_p3 = por %p802_p2, %p801_p1 }
   0x8   :  { %p804_p4 = pnand %p803_p3, %p797_p0 }
   0xa   :  { %807 = shalt.err (!%p804_p4)
}
   0xb   :  { %s850_s25 = smov [#allocation4]   ;;  %s808_s26 = scalar_lea.vmem %s22_s23, 16 }
   0xc   :  { %34 = dma.vmem_to_smem %s32_s20, 16, %s850_s25, [#allocation5]  }
   0xd   :  { %p809_p5 = scmp.ne.s32.totalorder %s22_s23, %s808_s26  ;;  %p813_p6 = scmp.lt.s32.totalorder %s22_s23, %s22_s23 }
   0xe   :  { %p814_p7 = scmp.lt.s32.totalorder %s808_s26, %s808_s26 }
  0x10   :  { %p815_p8 = por %p814_p7, %p813_p6 }
  0x12   :  { %p816_p9 = pnand %p815_p8, %p809_p5 }
  0x14   :  { %819 = shalt.err (!%p816_p9)
}
  0x15   :  { %s851_s2 = smov [#allocation2]   ;;  %s41_s28 = sshll.u32 %s2056_s3, 4  ;;  %s42_s28 = int_to_ptr.vmem [resolvable:$true] %s41_s28 }
  0x16   :  { %24 = dma.vmem_to_smem %s22_s23, 16, %s851_s2, [#allocation3]  }
  0x17   :  { %s51_s6 = sshll.u32 %s2057_s4, 4  ;;  %s820_s7 = scalar_lea.vmem %s42_s28, 16  ;;  %s52_s6 = int_to_ptr.vmem [resolvable:$true] %s51_s6 }
  0x18   :  { %p821_p10 = scmp.ne.s32.totalorder %s42_s28, %s820_s7  ;;  %p825_p11 = scmp.lt.s32.totalorder %s42_s28, %s42_s28 }
  0x19   :  { %p826_p12 = scmp.lt.s32.totalorder %s820_s7, %s820_s7 }
  0x1b   :  { %p827_p13 = por %p826_p12, %p825_p11 }
  0x1d   :  { %p828_p0 = pnand %p827_p13, %p821_p10 }
  0x1f   :  { %831 = shalt.err (!%p828_p0)
}
  0x20   :  { %s852_s8 = smov [#allocation6]   ;;  %s832_s9 = scalar_lea.vmem %s52_s6, 16 }
  0x21   :  { %44 = dma.vmem_to_smem %s42_s28, 16, %s852_s8, [#allocation5]  }
  0x22   :  { %p833_p1 = scmp.ne.s32.totalorder %s52_s6, %s832_s9  ;;  %p837_p2 = scmp.lt.s32.totalorder %s52_s6, %s52_s6 }
  0x23   :  { %p838_p3 = scmp.lt.s32.totalorder %s832_s9, %s832_s9 }
  0x25   :  { %p839_p4 = por %p838_p3, %p837_p2 }
  0x27   :  { %p840_p5 = pnand %p839_p4, %p833_p1 }
  0x29   :  { %843 = shalt.err (!%p840_p5)
}
  0x2a   :  { %s853_s3 = smov [#allocation7]  }
  0x2b   :  { %54 = dma.vmem_to_smem %s52_s6, 16, %s853_s3, [#allocation8]  }
  0x2c   :  { %844 = dma.done.wait [#allocation3], 16  }
  0x2d   :  { %845 = vsyncadd [#allocation3], 4294967280 }
  0x2e   :  { %846 = dma.done.wait [#allocation5], 32  }
  0x2f   :  { %847 = vsyncadd [#allocation5], 4294967264 }
  0x30   :  { %848 = dma.done.wait [#allocation8], 16  }
  0x31   :  { %849 = vsyncadd [#allocation8], 4294967280 }
  0x32   :  { %67 = sfence }
  0x33   :  { %s68_s4 = sld [smem:[#allocation2]]  ;;  %s746_s10 = sld [smem:[#allocation2 + $0x1]]  ;;  %v110_v0 = vld [vmem:[%s2053_s0] sm:$0xff]  ;;  %v111_v59 = vld [vmem:[%s2053_s0 + $0x8] sm:$0xff] }
  0x34   :  { %s747_s11 = sld [smem:[#allocation2 + $0x2]]  ;;  %s748_s12 = sld [smem:[#allocation2 + $0x3]] }
  0x35   :  { %s749_s13 = sld [smem:[#allocation2 + $0x4]]  ;;  %s750_s14 = sld [smem:[#allocation2 + $0x5]] }
  0x36   :  { %s751_s15 = sld [smem:[#allocation2 + $0x6]]  ;;  %s752_s16 = sld [smem:[#allocation2 + $0x7]] }
  0x37   :  { %s896_s17 = sld [smem:[#allocation2 + $0x8]]  ;;  %s898_s18 = sld [smem:[#allocation2 + $0x9]] }
  0x38   :  { %s903_s21 = sld [smem:[#allocation4]]  ;;  %s905_s22 = sld [smem:[#allocation4 + $0x1]] }
  0x39   :  { %s907_s23 = sld [smem:[#allocation4 + $0x2]]  ;;  %s909_s24 = sld [smem:[#allocation4 + $0x3]]  ;;  %v911_v1 = vstv %s68_s4  ;;  %v913_v2 = vstv %s746_s10 }
  0x3a   :  { %s915_s25 = sld [smem:[#allocation4 + $0x4]]  ;;  %s917_s26 = sld [smem:[#allocation4 + $0x5]]  ;;  %v119_v3 = vmul.f32 %v911_v1, %v110_v0  ;;  %v181_v4 = vmul.f32 %v913_v2, %v110_v0  ;;  %v921_v5 = vstv %s747_s11  ;;  %v923_v6 = vstv %s748_s12 }
  0x3b   :  { %s925_s2 = sld [smem:[#allocation4 + $0x6]]  ;;  %s927_s1 = sld [smem:[#allocation4 + $0x7]]  ;;  %v241_v7 = vmul.f32 %v921_v5, %v110_v0  ;;  %v301_v8 = vmul.f32 %v923_v6, %v110_v0  ;;  %v931_v9 = vstv %s749_s13  ;;  %v933_v10 = vstv %s750_s14 }
  0x3c   :  { %s935_s27 = sld [smem:[#allocation4 + $0x8]]  ;;  %s937_s28 = sld [smem:[#allocation4 + $0x9]]  ;;  %v361_v11 = vmul.f32 %v931_v9, %v110_v0  ;;  %v421_v12 = vmul.f32 %v933_v10, %v110_v0  ;;  %v941_v13 = vstv %s751_s15  ;;  %v943_v14 = vstv %s752_s16 }
  0x3d   :  { %s945_s29 = sld [smem:[#allocation6]]  ;;  %s947_s30 = sld [smem:[#allocation6 + $0x2]]  ;;  %v481_v15 = vmul.f32 %v941_v13, %v110_v0  ;;  %v541_v16 = vmul.f32 %v943_v14, %v110_v0  ;;  %v952_v17 = vstv %s896_s17  ;;  %v955_v18 = vstv %s898_s18 }
  0x3e   :  { %s957_s6 = sld [smem:[#allocation6 + $0x4]]  ;;  %s959_s7 = sld [smem:[#allocation6 + $0x6]]  ;;  %v962_v19 = vstv %s903_s21  ;;  %v965_v20 = vstv %s905_s22  ;;  %v601_v21 = vmul.f32 %v952_v17, %v110_v0  ;;  %v661_v22 = vmul.f32 %v955_v18, %v110_v0 }
  0x3f   :  { %s969_s8 = sld [smem:[#allocation6 + $0x8]]  ;;  %s971_s9 = sld [smem:[#allocation6 + $0xa]]  ;;  %v974_v23 = vadd.f32 %v962_v19, %v119_v3  ;;  %v977_v24 = vadd.f32 %v965_v20, %v181_v4  ;;  %v980_v25 = vstv %s907_s23  ;;  %v983_v26 = vstv %s909_s24 }
  0x40   :  { %s985_s3 = sld [smem:[#allocation6 + $0xc]]  ;;  %s987_s4 = sld [smem:[#allocation6 + $0xe]]  ;;  %v990_v27 = vadd.f32 %v980_v25, %v241_v7  ;;  %v993_v28 = vadd.f32 %v983_v26, %v301_v8  ;;  %v996_v29 = vstv %s915_s25  ;;  %v999_v30 = vstv %s917_s26 }
  0x41   :  { %s1001_s10 = sld [smem:[#allocation6 + $0x10]]  ;;  %s1003_s11 = sld [smem:[#allocation6 + $0x12]]  ;;  %v2067_v31 = vmax.f32 %v974_v23, 0.0  ;;  %v2066_v32 = vmax.f32 %v977_v24, 0.0  ;;  %v1008_v33 = vadd.f32 %v996_v29, %v361_v11  ;;  %v1011_v34 = vadd.f32 %v999_v30, %v421_v12 }
  0x42   :  { %s108_s12 = sld [smem:[#allocation7]]  ;;  %v2064_v35 = vmax.f32 %v990_v27, 0.0  ;;  %v2063_v36 = vmax.f32 %v993_v28, 0.0  ;;  %v1016_v37 = vstv %s925_s2  ;;  %v1019_v38 = vstv %s927_s1  ;;  %s1696_s13 = sld [smem:[#allocation6 + $0x7]] }
  0x43   :  { %v1022_v39 = vstv %s945_s29  ;;  %v1025_v40 = vstv %s947_s30  ;;  %v2061_v41 = vmax.f32 %v1008_v33, 0.0  ;;  %v2059_v42 = vmax.f32 %v1011_v34, 0.0  ;;  %s1700_s14 = sld [smem:[#allocation6 + $0x9]]  ;;  %s1706_s15 = sld [smem:[#allocation6 + $0xb]] }
  0x44   :  { %v145_v43 = vmul.f32 %v1022_v39, %v2067_v31  ;;  %v207_v44 = vmul.f32 %v1025_v40, %v2066_v32  ;;  %v1036_v45 = vstv %s957_s6  ;;  %v1039_v46 = vstv %s959_s7  ;;  %s1716_s16 = sld [smem:[#allocation6 + $0xd]]  ;;  %s1728_s17 = sld [smem:[#allocation6 + $0xf]] }
  0x45   :  { %v267_v47 = vmul.f32 %v1036_v45, %v2064_v35  ;;  %v327_v48 = vmul.f32 %v1039_v46, %v2063_v36  ;;  %v1048_v49 = vstv %s969_s8  ;;  %v1051_v50 = vstv %s971_s9  ;;  %s780_s20 = sld [smem:[#allocation6 + $0x11]]  ;;  %s782_s21 = sld [smem:[#allocation6 + $0x13]] }
  0x46   :  { %v387_v51 = vmul.f32 %v1048_v49, %v2061_v41  ;;  %v447_v52 = vmul.f32 %v1051_v50, %v2059_v42  ;;  %v1060_v53 = vadd.f32 %v1016_v37, %v481_v15  ;;  %v1063_v54 = vstv %s985_s3 }
  0x47   :  { %v1066_v55 = vadd.f32 %v1019_v38, %v541_v16  ;;  %v1069_v56 = vstv %s987_s4  ;;  %v1072_v57 = vstv %s935_s27  ;;  %v1075_v58 = vstv %s1001_s10  ;;  %s1660_s4 = sld [smem:[#allocation6 + $0x1]] }
  0x48   :  { %2188 = vst [vmem:[#allocation12_spill] sm:$0xff] %v1060_v53  ;;  %v1080_v60 = vstv %s108_s12  ;;  %v2060_v61 = vmax.f32 %v1060_v53, 0.0  ;;  %v1084_v62 = vadd.f32 %v1072_v57, %v601_v21  ;;  %v1087_v63 = vstv %s937_s28  ;;  %s1668_s10 = sld [smem:[#allocation7 + $0x1]]  ;;  %s1679_s12 = sld [smem:[#allocation6 + $0x5]] }
  0x49   :  { %2189 = vst [vmem:[#allocation13_spill] sm:$0xff] %v1066_v55  ;;  %v154_v0 = vadd.f32 %v1080_v60, %v145_v43  ;;  %v2062_v3 = vmax.f32 %v1066_v55, 0.0  ;;  %v1092_v4 = vadd.f32 %v1087_v63, %v661_v22  ;;  %v1095_v7 = vstv %s1003_s11  ;;  %s1677_s11 = sld [smem:[#allocation6 + $0x3]] }
  0x4a   :  { %2190 = vst [vmem:[#allocation14_spill] sm:$0xff] %v1084_v62  ;;  %v507_v8 = vmul.f32 %v1063_v54, %v2060_v61  ;;  %v2065_v11 = vmax.f32 %v1084_v62, 0.0  ;;  %v120_v12 = vmul.f32 %v911_v1, %v111_v59  ;;  %v182_v15 = vmul.f32 %v913_v2, %v111_v59 }
  0x4b   :  { %2191 = vst [vmem:[#allocation15_spill] sm:$0xff] %v1092_v4  ;;  %v215_v16 = vadd.f32 %v207_v44, %v154_v0  ;;  %v567_v21 = vmul.f32 %v1069_v56, %v2062_v3  ;;  %v2068_v22 = vmax.f32 %v1092_v4, 0.0  ;;  %v242_v43 = vmul.f32 %v921_v5, %v111_v59 }
  0x4c   :  { %v627_v42 = vmul.f32 %v1075_v58, %v2065_v11  ;;  %v1112_v61 = vadd.f32 %v962_v19, %v120_v12  ;;  %v1115_v41 = vadd.f32 %v965_v20, %v182_v15  ;;  %v302_v44 = vmul.f32 %v923_v6, %v111_v59 }
  0x4d   :  { %v275_v0 = vadd.f32 %v267_v47, %v215_v16  ;;  %v687_v3 = vmul.f32 %v1095_v7, %v2068_v22  ;;  %v1122_v36 = vadd.f32 %v980_v25, %v242_v43  ;;  %v362_v35 = vmul.f32 %v931_v9, %v111_v59 }
  0x4e   :  { %2192 = vst [vmem:[#allocation16_spill] sm:$0xff] %v1112_v61  ;;  %2193 = vst [vmem:[#allocation17_spill] sm:$0xff] %v1115_v41  ;;  %v2072_v11 = vmax.f32 %v1112_v61, 0.0  ;;  %v2073_v12 = vmax.f32 %v1115_v41, 0.0  ;;  %v1128_v32 = vadd.f32 %v983_v26, %v302_v44  ;;  %v422_v15 = vmul.f32 %v933_v10, %v111_v59 }
  0x4f   :  { %2194 = vst [vmem:[#allocation18_spill] sm:$0xff] %v1122_v36  ;;  %v335_v31 = vadd.f32 %v327_v48, %v275_v0  ;;  %v2075_v47 = vmax.f32 %v1122_v36, 0.0  ;;  %v1133_v16 = vadd.f32 %v996_v29, %v362_v35  ;;  %v482_v43 = vmul.f32 %v941_v13, %v111_v59 }
  0x50   :  { %2195 = vst [vmem:[#allocation19_spill] sm:$0xff] %v1128_v32  ;;  %v146_v22 = vmul.f32 %v1022_v39, %v2072_v11  ;;  %v208_v4 = vmul.f32 %v1025_v40, %v2073_v12  ;;  %v2077_v44 = vmax.f32 %v1128_v32, 0.0  ;;  %v1144_v62 = vadd.f32 %v999_v30, %v422_v15 }
  0x51   :  { %v395_v48 = vadd.f32 %v387_v51, %v335_v31  ;;  %v268_v35 = vmul.f32 %v1036_v45, %v2075_v47  ;;  %v2081_v0 = vmax.f32 %v1133_v16, 0.0  ;;  %v1151_v55 = vadd.f32 %v1016_v37, %v482_v43  ;;  %v1162_v31 = vld [vmem:[%s2053_s0 + $0x10] sm:$0xff] }
  0x52   :  { %2196 = vst [vmem:[#allocation20_spill] sm:$0xff] %v1144_v62  ;;  %v155_v11 = vadd.f32 %v1080_v60, %v146_v22  ;;  %v328_v12 = vmul.f32 %v1039_v46, %v2077_v44  ;;  %v2082_v41 = vmax.f32 %v1144_v62, 0.0  ;;  %v542_v15 = vmul.f32 %v943_v14, %v111_v59 }
  0x53   :  { %2197 = vst [vmem:[#allocation21_spill] sm:$0xff] %v1151_v55  ;;  %v455_v51 = vadd.f32 %v447_v52, %v395_v48  ;;  %v388_v43 = vmul.f32 %v1048_v49, %v2081_v0  ;;  %v2083_v22 = vmax.f32 %v1151_v55, 0.0  ;;  %v602_v47 = vmul.f32 %v952_v17, %v111_v59 }
  0x54   :  { %v216_v32 = vadd.f32 %v208_v4, %v155_v11  ;;  %v448_v44 = vmul.f32 %v1051_v50, %v2082_v41  ;;  %v1173_v36 = vadd.f32 %v1019_v38, %v542_v15  ;;  %v662_v53 = vmul.f32 %v955_v18, %v111_v59 }
  0x55   :  { %v515_v61 = vadd.f32 %v507_v8, %v455_v51  ;;  %v508_v52 = vmul.f32 %v1063_v54, %v2083_v22  ;;  %v1180_v48 = vadd.f32 %v1072_v57, %v602_v47  ;;  %v121_v4 = vmul.f32 %v911_v1, %v1162_v31 }
  0x56   :  { %2198 = vst [vmem:[#allocation22_spill] sm:$0xff] %v1173_v36  ;;  %v276_v11 = vadd.f32 %v268_v35, %v216_v32  ;;  %v2085_v0 = vmax.f32 %v1173_v36, 0.0  ;;  %v1186_v41 = vadd.f32 %v1087_v63, %v662_v53  ;;  %v183_v59 = vmul.f32 %v913_v2, %v1162_v31 }
  0x57   :  { %2199 = vst [vmem:[#allocation23_spill] sm:$0xff] %v1180_v48  ;;  %v575_v8 = vadd.f32 %v567_v21, %v515_v61  ;;  %v2086_v15 = vmax.f32 %v1180_v48, 0.0  ;;  %v1192_v51 = vadd.f32 %v962_v19, %v121_v4  ;;  %v243_v47 = vmul.f32 %v921_v5, %v1162_v31 }
  0x58   :  { %2200 = vst [vmem:[#allocation24_spill] sm:$0xff] %v1186_v41  ;;  %v336_v22 = vadd.f32 %v328_v12, %v276_v11  ;;  %v568_v32 = vmul.f32 %v1069_v56, %v2085_v0  ;;  %v2087_v53 = vmax.f32 %v1186_v41, 0.0  ;;  %v1201_v35 = vadd.f32 %v965_v20, %v183_v59 }
  0x59   :  { %v635_v55 = vadd.f32 %v627_v42, %v575_v8  ;;  %v628_v61 = vmul.f32 %v1075_v58, %v2086_v15  ;;  %v2089_v21 = vmax.f32 %v1192_v51, 0.0  ;;  %v1208_v4 = vadd.f32 %v980_v25, %v243_v47 }
  0x5a   :  { %v396_v12 = vadd.f32 %v388_v43, %v336_v22  ;;  %v688_v11 = vmul.f32 %v1095_v7, %v2087_v53  ;;  %v2088_v0 = vmax.f32 %v1201_v35, 0.0  ;;  %v303_v59 = vmul.f32 %v923_v6, %v1162_v31 }
  0x5b   :  { %2201 = vst [vmem:[#allocation25_spill] sm:$0xff] %v1208_v4  ;;  %v695_v42 = vadd.f32 %v687_v3, %v635_v55  ;;  %v147_v8 = vmul.f32 %v1022_v39, %v2089_v21  ;;  %v2092_v15 = vmax.f32 %v1208_v4, 0.0  ;;  %v363_v47 = vmul.f32 %v931_v9, %v1162_v31 }
  0x5c   :  { %v456_v43 = vadd.f32 %v448_v44, %v396_v12  ;;  %v209_v22 = vmul.f32 %v1025_v40, %v2088_v0  ;;  %v1226_v53 = vadd.f32 %v983_v26, %v303_v59  ;;  %v423_v55 = vmul.f32 %v933_v10, %v1162_v31 }
  0x5d   :  { %720 = vst [vmem:[%s2058_s5] sm:$0xff] %v695_v42  ;;  %v156_v3 = vadd.f32 %v1080_v60, %v147_v8  ;;  %v269_v44 = vmul.f32 %v1036_v45, %v2092_v15  ;;  %v1238_v12 = vadd.f32 %v996_v29, %v363_v47  ;;  %v483_v59 = vmul.f32 %v941_v13, %v1162_v31 }
  0x5e   :  { %2202 = vst [vmem:[#allocation26_spill] sm:$0xff] %v1226_v53  ;;  %v516_v0 = vadd.f32 %v508_v52, %v456_v43  ;;  %v2094_v21 = vmax.f32 %v1226_v53, 0.0  ;;  %v1244_v41 = vadd.f32 %v999_v30, %v423_v55  ;;  %v543_v42 = vmul.f32 %v943_v14, %v1162_v31 }
  0x5f   :  { %2203 = vst [vmem:[#allocation27_spill] sm:$0xff] %v1238_v12  ;;  %v217_v8 = vadd.f32 %v209_v22, %v156_v3  ;;  %v2097_v48 = vmax.f32 %v1238_v12, 0.0  ;;  %v1250_v15 = vadd.f32 %v1016_v37, %v483_v59  ;;  %v603_v47 = vmul.f32 %v952_v17, %v1162_v31  ;;  %v113_v22 = vld [vmem:[%s2053_s0 + $0x18] sm:$0xff] }
  0x60   :  { %2204 = vst [vmem:[#allocation28_spill] sm:$0xff] %v1244_v41  ;;  %v576_v36 = vadd.f32 %v568_v32, %v516_v0  ;;  %v329_v52 = vmul.f32 %v1039_v46, %v2094_v21  ;;  %v2099_v43 = vmax.f32 %v1244_v41, 0.0  ;;  %v1259_v55 = vadd.f32 %v1019_v38, %v543_v42  ;;  %v114_v41 = vld [vmem:[%s2053_s0 + $0x20] sm:$0xff] }
  0x61   :  { %2205 = vst [vmem:[#allocation29_spill] sm:$0xff] %v1250_v15  ;;  %v277_v3 = vadd.f32 %v269_v44, %v217_v8  ;;  %v389_v59 = vmul.f32 %v1048_v49, %v2097_v48  ;;  %v2100_v0 = vmax.f32 %v1250_v15, 0.0  ;;  %v1269_v32 = vadd.f32 %v1072_v57, %v603_v47 }
  0x62   :  { %2206 = vst [vmem:[#allocation30_spill] sm:$0xff] %v1259_v55  ;;  %v636_v21 = vadd.f32 %v628_v61, %v576_v36  ;;  %v449_v42 = vmul.f32 %v1051_v50, %v2099_v43  ;;  %v2102_v53 = vmax.f32 %v1259_v55, 0.0  ;;  %v663_v62 = vmul.f32 %v955_v18, %v1162_v31 }
  0x63   :  { %2207 = vst [vmem:[#allocation31_spill] sm:$0xff] %v1269_v32  ;;  %v337_v44 = vadd.f32 %v329_v52, %v277_v3  ;;  %v509_v8 = vmul.f32 %v1063_v54, %v2100_v0  ;;  %v2101_v48 = vmax.f32 %v1269_v32, 0.0  ;;  %v122_v47 = vmul.f32 %v911_v1, %v113_v22 }
  0x64   :  { %v696_v12 = vadd.f32 %v688_v11, %v636_v21  ;;  %v569_v36 = vmul.f32 %v1069_v56, %v2102_v53  ;;  %v1286_v61 = vadd.f32 %v1087_v63, %v663_v62  ;;  %v184_v43 = vmul.f32 %v913_v2, %v113_v22 }
  0x65   :  { %v397_v31 = vadd.f32 %v389_v59, %v337_v44  ;;  %v629_v52 = vmul.f32 %v1075_v58, %v2101_v48  ;;  %v1293_v3 = vadd.f32 %v962_v19, %v122_v47  ;;  %v244_v0 = vmul.f32 %v921_v5, %v113_v22 }
  0x66   :  { %2208 = vst [vmem:[#allocation32_spill] sm:$0xff] %v1286_v61  ;;  %721 = vst [vmem:[%s2058_s5 + $0x8] sm:$0xff] %v696_v12  ;;  %v2106_v21 = vmax.f32 %v1286_v61, 0.0  ;;  %v1301_v62 = vadd.f32 %v965_v20, %v184_v43  ;;  %v304_v11 = vmul.f32 %v923_v6, %v113_v22  ;;  %v364_v59 = vmul.f32 %v931_v9, %v113_v22 }
  0x67   :  { %2209 = vst [vmem:[#allocation33_spill] sm:$0xff] %v1293_v3  ;;  %v457_v44 = vadd.f32 %v449_v42, %v397_v31  ;;  %v2108_v48 = vmax.f32 %v1293_v3, 0.0  ;;  %v1307_v47 = vadd.f32 %v980_v25, %v244_v0  ;;  %v424_v53 = vmul.f32 %v933_v10, %v113_v22 }
  0x68   :  { %2210 = vst [vmem:[#allocation34_spill] sm:$0xff] %v1301_v62  ;;  %v689_v12 = vmul.f32 %v1095_v7, %v2106_v21  ;;  %v2110_v32 = vmax.f32 %v1301_v62, 0.0  ;;  %v1315_v43 = vadd.f32 %v983_v26, %v304_v11  ;;  %v1318_v55 = vadd.f32 %v996_v29, %v364_v59 }
  0x69   :  { %2211 = vst [vmem:[#allocation35_spill] sm:$0xff] %v1307_v47  ;;  %v517_v42 = vadd.f32 %v509_v8, %v457_v44  ;;  %v148_v0 = vmul.f32 %v1022_v39, %v2108_v48  ;;  %v2111_v31 = vmax.f32 %v1307_v47, 0.0  ;;  %v1325_v15 = vadd.f32 %v999_v30, %v424_v53 }
  0x6a   :  { %2212 = vst [vmem:[#allocation36_spill] sm:$0xff] %v1315_v43  ;;  %2213 = vst [vmem:[#allocation37_spill] sm:$0xff] %v1318_v55  ;;  %v210_v21 = vmul.f32 %v1025_v40, %v2110_v32  ;;  %v2116_v11 = vmax.f32 %v1315_v43, 0.0  ;;  %v2117_v61 = vmax.f32 %v1318_v55, 0.0  ;;  %v484_v59 = vmul.f32 %v941_v13, %v113_v22 }
  0x6b   :  { %2214 = vst [vmem:[#allocation38_spill] sm:$0xff] %v1325_v15  ;;  %v577_v8 = vadd.f32 %v569_v36, %v517_v42  ;;  %v157_v44 = vadd.f32 %v1080_v60, %v148_v0  ;;  %v270_v48 = vmul.f32 %v1036_v45, %v2111_v31  ;;  %v2121_v53 = vmax.f32 %v1325_v15, 0.0 }
  0x6c   :  { %v330_v32 = vmul.f32 %v1039_v46, %v2116_v11  ;;  %v390_v36 = vmul.f32 %v1048_v49, %v2117_v61  ;;  %v1348_v42 = vadd.f32 %v1016_v37, %v484_v59  ;;  %v544_v0 = vmul.f32 %v943_v14, %v113_v22 }
  0x6d   :  { %v637_v31 = vadd.f32 %v629_v52, %v577_v8  ;;  %v218_v47 = vadd.f32 %v210_v21, %v157_v44  ;;  %v450_v62 = vmul.f32 %v1051_v50, %v2121_v53  ;;  %v604_v3 = vmul.f32 %v952_v17, %v113_v22 }
  0x6e   :  { %2215 = vst [vmem:[#allocation39_spill] sm:$0xff] %v1348_v42  ;;  %v2120_v43 = vmax.f32 %v1348_v42, 0.0  ;;  %v1357_v11 = vadd.f32 %v1019_v38, %v544_v0  ;;  %v664_v61 = vmul.f32 %v955_v18, %v113_v22  ;;  %v123_v59 = vmul.f32 %v911_v1, %v114_v41 }
  0x6f   :  { %v697_v55 = vadd.f32 %v689_v12, %v637_v31  ;;  %v278_v4 = vadd.f32 %v270_v48, %v218_v47  ;;  %v1362_v52 = vadd.f32 %v1072_v57, %v604_v3  ;;  %v185_v21 = vmul.f32 %v913_v2, %v114_v41 }
  0x70   :  { %2216 = vst [vmem:[#allocation40_spill] sm:$0xff] %v1357_v11  ;;  %v510_v8 = vmul.f32 %v1063_v54, %v2120_v43  ;;  %v2122_v44 = vmax.f32 %v1357_v11, 0.0  ;;  %v1370_v0 = vadd.f32 %v1087_v63, %v664_v61  ;;  %v1373_v22 = vadd.f32 %v962_v19, %v123_v59 }
  0x71   :  { %2217 = vst [vmem:[#allocation41_spill] sm:$0xff] %v1362_v52  ;;  %722 = vst [vmem:[%s2058_s5 + $0x10] sm:$0xff] %v697_v55  ;;  %v338_v48 = vadd.f32 %v330_v32, %v278_v4  ;;  %v2124_v3 = vmax.f32 %v1362_v52, 0.0  ;;  %v1380_v47 = vadd.f32 %v965_v20, %v185_v21  ;;  %v245_v12 = vmul.f32 %v921_v5, %v114_v41 }
  0x72   :  { %2218 = vst [vmem:[#allocation42_spill] sm:$0xff] %v1370_v0  ;;  %2219 = vst [vmem:[#allocation43_spill] sm:$0xff] %v1373_v22  ;;  %v570_v61 = vmul.f32 %v1069_v56, %v2122_v44  ;;  %v2126_v31 = vmax.f32 %v1370_v0, 0.0  ;;  %v2128_v59 = vmax.f32 %v1373_v22, 0.0  ;;  %v305_v43 = vmul.f32 %v923_v6, %v114_v41 }
  0x73   :  { %2220 = vst [vmem:[#allocation44_spill] sm:$0xff] %v1380_v47  ;;  %v398_v53 = vadd.f32 %v390_v36, %v338_v48  ;;  %v630_v4 = vmul.f32 %v1075_v58, %v2124_v3  ;;  %v2130_v55 = vmax.f32 %v1380_v47, 0.0  ;;  %v1394_v32 = vadd.f32 %v980_v25, %v245_v12 }
  0x74   :  { %v690_v21 = vmul.f32 %v1095_v7, %v2126_v31  ;;  %v149_v44 = vmul.f32 %v1022_v39, %v2128_v59  ;;  %v1403_v11 = vadd.f32 %v983_v26, %v305_v43  ;;  %v365_v36 = vmul.f32 %v931_v9, %v114_v41 }
  0x75   :  { %2221 = vst [vmem:[#allocation45_spill] sm:$0xff] %v1394_v32  ;;  %v458_v48 = vadd.f32 %v450_v62, %v398_v53  ;;  %v211_v3 = vmul.f32 %v1025_v40, %v2130_v55  ;;  %v2133_v12 = vmax.f32 %v1394_v32, 0.0  ;;  %v425_v0 = vmul.f32 %v933_v10, %v114_v41 }
  0x76   :  { %2222 = vst [vmem:[#allocation46_spill] sm:$0xff] %v1403_v11  ;;  %v158_v31 = vadd.f32 %v1080_v60, %v149_v44  ;;  %v2134_v52 = vmax.f32 %v1403_v11, 0.0  ;;  %v1414_v59 = vadd.f32 %v996_v29, %v365_v36  ;;  %v485_v43 = vmul.f32 %v941_v13, %v114_v41 }
  0x77   :  { %v518_v42 = vadd.f32 %v510_v8, %v458_v48  ;;  %v271_v62 = vmul.f32 %v1036_v45, %v2133_v12  ;;  %v1421_v53 = vadd.f32 %v999_v30, %v425_v0  ;;  %v545_v55 = vmul.f32 %v943_v14, %v114_v41 }
  0x78   :  { %2223 = vst [vmem:[#allocation47_spill] sm:$0xff] %v1414_v59  ;;  %v219_v15 = vadd.f32 %v211_v3, %v158_v31  ;;  %v331_v44 = vmul.f32 %v1039_v46, %v2134_v52  ;;  %v2139_v36 = vmax.f32 %v1414_v59, 0.0  ;;  %v1429_v47 = vadd.f32 %v1016_v37, %v485_v43  ;;  %v115_v3 = vld [vmem:[%s2053_s0 + $0x28] sm:$0xff] }
  0x79   :  { %2224 = vst [vmem:[#allocation48_spill] sm:$0xff] %v1421_v53  ;;  %v578_v8 = vadd.f32 %v570_v61, %v518_v42  ;;  %v2138_v48 = vmax.f32 %v1421_v53, 0.0  ;;  %v1433_v12 = vadd.f32 %v1019_v38, %v545_v55  ;;  %v605_v0 = vmul.f32 %v952_v17, %v114_v41 }
  0x7a   :  { %2225 = vst [vmem:[#allocation49_spill] sm:$0xff] %v1429_v47  ;;  %v279_v31 = vadd.f32 %v271_v62, %v219_v15  ;;  %v391_v52 = vmul.f32 %v1048_v49, %v2139_v36  ;;  %v2141_v43 = vmax.f32 %v1429_v47, 0.0  ;;  %v665_v42 = vmul.f32 %v955_v18, %v114_v41 }
  0x7b   :  { %2226 = vst [vmem:[#allocation50_spill] sm:$0xff] %v1433_v12  ;;  %v638_v61 = vadd.f32 %v630_v4, %v578_v8  ;;  %v451_v55 = vmul.f32 %v1051_v50, %v2138_v48  ;;  %v2140_v11 = vmax.f32 %v1433_v12, 0.0  ;;  %v1449_v32 = vadd.f32 %v1072_v57, %v605_v0 }
  0x7c   :  { %v339_v22 = vadd.f32 %v331_v44, %v279_v31  ;;  %v511_v15 = vmul.f32 %v1063_v54, %v2141_v43  ;;  %v1455_v62 = vadd.f32 %v1087_v63, %v665_v42  ;;  %v124_v41 = vmul.f32 %v911_v1, %v115_v3 }
  0x7d   :  { %2227 = vst [vmem:[#allocation51_spill] sm:$0xff] %v1449_v32  ;;  %v698_v4 = vadd.f32 %v690_v21, %v638_v61  ;;  %v571_v8 = vmul.f32 %v1069_v56, %v2140_v11  ;;  %v2143_v48 = vmax.f32 %v1449_v32, 0.0  ;;  %v186_v0 = vmul.f32 %v913_v2, %v115_v3 }
  0x7e   :  { %2228 = vst [vmem:[#allocation52_spill] sm:$0xff] %v1455_v62  ;;  %v399_v36 = vadd.f32 %v391_v52, %v339_v22  ;;  %v2145_v44 = vmax.f32 %v1455_v62, 0.0  ;;  %v1465_v31 = vadd.f32 %v962_v19, %v124_v41  ;;  %v246_v42 = vmul.f32 %v921_v5, %v115_v3 }
  0x7f   :  { %723 = vst [vmem:[%s2058_s5 + $0x18] sm:$0xff] %v698_v4  ;;  %v631_v21 = vmul.f32 %v1075_v58, %v2143_v48  ;;  %v1475_v61 = vadd.f32 %v965_v20, %v186_v0  ;;  %v306_v52 = vmul.f32 %v923_v6, %v115_v3  ;;  %v366_v22 = vmul.f32 %v931_v9, %v115_v3 }
  0x80   :  { %2229 = vst [vmem:[#allocation53_spill] sm:$0xff] %v1465_v31  ;;  %v459_v11 = vadd.f32 %v451_v55, %v399_v36  ;;  %v691_v41 = vmul.f32 %v1095_v7, %v2145_v44  ;;  %v2148_v43 = vmax.f32 %v1465_v31, 0.0  ;;  %v1484_v4 = vadd.f32 %v980_v25, %v246_v42 }
  0x81   :  { %2230 = vst [vmem:[#allocation54_spill] sm:$0xff] %v1475_v61  ;;  %v2150_v32 = vmax.f32 %v1475_v61, 0.0  ;;  %v1488_v48 = vadd.f32 %v983_v26, %v306_v52  ;;  %v1491_v0 = vadd.f32 %v996_v29, %v366_v22  ;;  %v426_v12 = vmul.f32 %v933_v10, %v115_v3 }
  0x82   :  { %2231 = vst [vmem:[#allocation55_spill] sm:$0xff] %v1484_v4  ;;  %v519_v36 = vadd.f32 %v511_v15, %v459_v11  ;;  %v150_v55 = vmul.f32 %v1022_v39, %v2148_v43  ;;  %v2151_v44 = vmax.f32 %v1484_v4, 0.0  ;;  %v486_v42 = vmul.f32 %v941_v13, %v115_v3 }
  0x83   :  { %2232 = vst [vmem:[#allocation56_spill] sm:$0xff] %v1488_v48  ;;  %2233 = vst [vmem:[#allocation57_spill] sm:$0xff] %v1491_v0  ;;  %v212_v62 = vmul.f32 %v1025_v40, %v2150_v32  ;;  %v2155_v52 = vmax.f32 %v1488_v48, 0.0  ;;  %v1505_v47 = vadd.f32 %v999_v30, %v426_v12  ;;  %v116_v32 = vld [vmem:[%s2053_s0 + $0x30] sm:$0xff]  ;;  %v2236_v12 = vmax.f32 %v1491_v0, 0.0 }
  0x84   :  { %v579_v11 = vadd.f32 %v571_v8, %v519_v36  ;;  %v159_v15 = vadd.f32 %v1080_v60, %v150_v55  ;;  %v272_v43 = vmul.f32 %v1036_v45, %v2151_v44  ;;  %v1512_v53 = vadd.f32 %v1016_v37, %v486_v42 }
  0x85   :  { %2234 = vst [vmem:[#allocation58_spill] sm:$0xff] %v1505_v47  ;;  %v332_v22 = vmul.f32 %v1039_v46, %v2155_v52  ;;  %v392_v8 = vmul.f32 %v1048_v49, %v2236_v12  ;;  %v2160_v36 = vmax.f32 %v1505_v47, 0.0  ;;  %v546_v55 = vmul.f32 %v943_v14, %v115_v3 }
  0x86   :  { %2235 = vst [vmem:[#allocation59_spill] sm:$0xff] %v1512_v53  ;;  %v639_v44 = vadd.f32 %v631_v21, %v579_v11  ;;  %v220_v4 = vadd.f32 %v212_v62, %v159_v15  ;;  %v2159_v42 = vmax.f32 %v1512_v53, 0.0  ;;  %v606_v59 = vmul.f32 %v952_v17, %v115_v3 }
  0x87   :  { %v452_v48 = vmul.f32 %v1051_v50, %v2160_v36  ;;  %v1531_v52 = vadd.f32 %v1019_v38, %v546_v55  ;;  %v666_v0 = vmul.f32 %v955_v18, %v115_v3  ;;  %v125_v12 = vmul.f32 %v911_v1, %v116_v32 }
  0x88   :  { %v699_v61 = vadd.f32 %v691_v41, %v639_v44  ;;  %v280_v31 = vadd.f32 %v272_v43, %v220_v4  ;;  %v512_v62 = vmul.f32 %v1063_v54, %v2159_v42  ;;  %v1539_v21 = vadd.f32 %v1072_v57, %v606_v59 }
  0x89   :  { %2237 = vst [vmem:[#allocation60_spill] sm:$0xff] %v1531_v52  ;;  %v2161_v11 = vmax.f32 %v1531_v52, 0.0  ;;  %v1543_v15 = vadd.f32 %v1087_v63, %v666_v0  ;;  %v1546_v55 = vadd.f32 %v962_v19, %v125_v12  ;;  %v187_v3 = vmul.f32 %v913_v2, %v116_v32 }
  0x8a   :  { %2238 = vst [vmem:[#allocation61_spill] sm:$0xff] %v1539_v21  ;;  %724 = vst [vmem:[%s2058_s5 + $0x20] sm:$0xff] %v699_v61  ;;  %v340_v43 = vadd.f32 %v332_v22, %v280_v31  ;;  %v2163_v44 = vmax.f32 %v1539_v21, 0.0  ;;  %v247_v59 = vmul.f32 %v921_v5, %v116_v32  ;;  %v307_v41 = vmul.f32 %v923_v6, %v116_v32 }
  0x8b   :  { %2239 = vst [vmem:[#allocation62_spill] sm:$0xff] %v1543_v15  ;;  %v572_v4 = vmul.f32 %v1069_v56, %v2161_v11  ;;  %v2165_v0 = vmax.f32 %v1543_v15, 0.0  ;;  %v2167_v12 = vmax.f32 %v1546_v55, 0.0  ;;  %v1561_v42 = vadd.f32 %v965_v20, %v187_v3 }
  0x8c   :  { %v400_v36 = vadd.f32 %v392_v8, %v340_v43  ;;  %v632_v31 = vmul.f32 %v1075_v58, %v2163_v44  ;;  %v1567_v61 = vadd.f32 %v980_v25, %v247_v59  ;;  %v1570_v22 = vadd.f32 %v983_v26, %v307_v41 }
  0x8d   :  { %2240 = vst [vmem:[#allocation63_spill] sm:$0xff] %v1561_v42  ;;  %v692_v11 = vmul.f32 %v1095_v7, %v2165_v0  ;;  %v151_v3 = vmul.f32 %v1022_v39, %v2167_v12  ;;  %v2170_v8 = vmax.f32 %v1561_v42, 0.0  ;;  %v367_v43 = vmul.f32 %v931_v9, %v116_v32 }
  0x8e   :  { %2241 = vst [vmem:[#allocation64_spill] sm:$0xff] %v1567_v61  ;;  %2242 = vst [vmem:[#allocation65_spill] sm:$0xff] %v1570_v22  ;;  %v460_v21 = vadd.f32 %v452_v48, %v400_v36  ;;  %v2172_v44 = vmax.f32 %v1567_v61, 0.0  ;;  %v2174_v59 = vmax.f32 %v1570_v22, 0.0  ;;  %v427_v41 = vmul.f32 %v933_v10, %v116_v32 }
  0x8f   :  { %v160_v52 = vadd.f32 %v1080_v60, %v151_v3  ;;  %v213_v0 = vmul.f32 %v1025_v40, %v2170_v8  ;;  %v1588_v15 = vadd.f32 %v996_v29, %v367_v43  ;;  %v487_v12 = vmul.f32 %v941_v13, %v116_v32 }
  0x90   :  { %v520_v53 = vadd.f32 %v512_v62, %v460_v21  ;;  %v273_v48 = vmul.f32 %v1036_v45, %v2172_v44  ;;  %v333_v36 = vmul.f32 %v1039_v46, %v2174_v59  ;;  %v1598_v3 = vadd.f32 %v999_v30, %v427_v41  ;;  %v117_v41 = vld [vmem:[%s2053_s0 + $0x38] sm:$0xff] }
  0x91   :  { %v221_v47 = vadd.f32 %v213_v0, %v160_v52  ;;  %v2176_v8 = vmax.f32 %v1588_v15, 0.0  ;;  %v1602_v43 = vadd.f32 %v1016_v37, %v487_v12  ;;  %v547_v42 = vmul.f32 %v943_v14, %v116_v32 }
  0x92   :  { %2243 = vst [vmem:[#allocation66_spill] sm:$0xff] %v1598_v3  ;;  %v580_v62 = vadd.f32 %v572_v4, %v520_v53  ;;  %v2177_v21 = vmax.f32 %v1598_v3, 0.0  ;;  %v607_v44 = vmul.f32 %v952_v17, %v116_v32  ;;  %v667_v22 = vmul.f32 %v955_v18, %v116_v32 }
  0x93   :  { %v281_v59 = vadd.f32 %v273_v48, %v221_v47  ;;  %v393_v52 = vmul.f32 %v1048_v49, %v2176_v8  ;;  %v504_v0 = vmax.f32 %v1602_v43, 0.0  ;;  %v1616_v12 = vadd.f32 %v1019_v38, %v547_v42 }
  0x94   :  { %v640_v53 = vadd.f32 %v632_v31, %v580_v62  ;;  %v453_v4 = vmul.f32 %v1051_v50, %v2177_v21  ;;  %v1622_v32 = vadd.f32 %v1072_v57, %v607_v44  ;;  %v1625_v61 = vadd.f32 %v1087_v63, %v667_v22 }
  0x95   :  { %v341_v47 = vadd.f32 %v333_v36, %v281_v59  ;;  %v513_v48 = vmul.f32 %v1063_v54, %v504_v0  ;;  %v2186_v8 = vmax.f32 %v1616_v12, 0.0  ;;  %v126_v42 = vmul.f32 %v911_v1, %v117_v41 }
  0x96   :  { %v700_v31 = vadd.f32 %v692_v11, %v640_v53  ;;  %v2184_v62 = vmax.f32 %v1622_v32, 0.0  ;;  %v2182_v21 = vmax.f32 %v1625_v61, 0.0  ;;  %v188_v44 = vmul.f32 %v913_v2, %v117_v41 }
  0x97   :  { %v401_v3 = vadd.f32 %v393_v52, %v341_v47  ;;  %v573_v22 = vmul.f32 %v1069_v56, %v2186_v8  ;;  %v1639_v59 = vadd.f32 %v962_v19, %v126_v42  ;;  %v248_v36 = vmul.f32 %v921_v5, %v117_v41 }
  0x98   :  { %725 = vst [vmem:[%s2058_s5 + $0x28] sm:$0xff] %v700_v31  ;;  %v633_v1 = vmul.f32 %v1075_v58, %v2184_v62  ;;  %v693_v2 = vmul.f32 %v1095_v7, %v2182_v21  ;;  %v1652_v11 = vadd.f32 %v965_v20, %v188_v44  ;;  %v308_v19 = vmul.f32 %v923_v6, %v117_v41 }
  0x99   :  { %v461_v52 = vadd.f32 %v453_v4, %v401_v3  ;;  %v143_v5 = vmax.f32 %v1639_v59, 0.0  ;;  %v1657_v53 = vadd.f32 %v980_v25, %v248_v36  ;;  %v368_v47 = vmul.f32 %v931_v9, %v117_v41 }
  0x9a   :  { %v205_v42 = vmax.f32 %v1652_v11, 0.0  ;;  %v1664_v31 = vadd.f32 %v983_v26, %v308_v19  ;;  %v428_v20 = vmul.f32 %v933_v10, %v117_v41  ;;  %v488_v44 = vmul.f32 %v941_v13, %v117_v41  ;;  %v2359_v11 = vld [vmem:[#allocation66_spill] sm:$0xff] }
  0x9b   :  { %v521_v6 = vadd.f32 %v513_v48, %v461_v52  ;;  %v152_v25 = vmul.f32 %v1022_v39, %v143_v5  ;;  %v265_v9 = vmax.f32 %v1657_v53, 0.0  ;;  %v1675_v3 = vadd.f32 %v996_v29, %v368_v47 }
  0x9c   :  { %v214_v10 = vmul.f32 %v1025_v40, %v205_v42  ;;  %v325_v13 = vmax.f32 %v1664_v31, 0.0  ;;  %v1686_v26 = vadd.f32 %v999_v30, %v428_v20  ;;  %v1689_v39 = vadd.f32 %v1016_v37, %v488_v44 }
  0x9d   :  { %v581_v4 = vadd.f32 %v573_v22, %v521_v6  ;;  %v161_v29 = vadd.f32 %v1080_v60, %v152_v25  ;;  %v274_v48 = vmul.f32 %v1036_v45, %v265_v9  ;;  %v2187_v36 = vmax.f32 %v1675_v3, 0.0 }
  0x9e   :  { %v2185_v40 = vmax.f32 %v1686_v26, 0.0  ;;  %v548_v30 = vmul.f32 %v943_v14, %v117_v41  ;;  %v334_v60 = vmul.f32 %v1039_v46, %v325_v13  ;;  %v608_v45 = vmul.f32 %v952_v17, %v117_v41 }
  0x9f   :  { %v641_v37 = vadd.f32 %v633_v1, %v581_v4  ;;  %v222_v19 = vadd.f32 %v214_v10, %v161_v29  ;;  %v394_v22 = vmul.f32 %v1048_v49, %v2187_v36  ;;  %v2183_v52 = vmax.f32 %v1689_v39, 0.0  ;;  %v2301_v36 = vld [vmem:[#allocation44_spill] sm:$0xff] }
  0xa0   :  { %v1713_v14 = vadd.f32 %v1019_v38, %v548_v30  ;;  %v668_v1 = vmul.f32 %v955_v18, %v117_v41  ;;  %v1719_v17 = vadd.f32 %v1072_v57, %v608_v45  ;;  %v1722_v20 = vstv %s1660_s4 }
  0xa1   :  { %v701_v46 = vadd.f32 %v693_v2, %v641_v37  ;;  %v282_v47 = vadd.f32 %v274_v48, %v222_v19  ;;  %v454_v49 = vmul.f32 %v1051_v50, %v2185_v40  ;;  %v2244_v38 = vmax.f32 %v974_v23, 0.0 }
  0xa2   :  { %v2181_v44 = vmax.f32 %v1713_v14, 0.0  ;;  %v1734_v41 = vstv %s1668_s10  ;;  %v1740_v2 = vadd.f32 %v1087_v63, %v668_v1  ;;  %v1743_v50 = vstv %s1677_s11 }
  0xa3   :  { %v163_v18 = vmul.f32 %v1722_v20, %v2244_v38  ;;  %726 = vst [vmem:[%s2058_s5 + $0x30] sm:$0xff] %v701_v46  ;;  %v342_v57 = vadd.f32 %v334_v60, %v282_v47  ;;  %v1746_v6 = vstv %s1679_s12  ;;  %v514_v23 = vmul.f32 %v1063_v54, %v2183_v52 }
  0xa4   :  { %v2245_v10 = vmax.f32 %v977_v24, 0.0  ;;  %v2180_v63 = vmax.f32 %v1719_v17, 0.0  ;;  %v2246_v48 = vmax.f32 %v990_v27, 0.0  ;;  %v1760_v37 = vstv %s1696_s13 }
  0xa5   :  { %v172_v25 = vadd.f32 %v1734_v41, %v163_v18  ;;  %v402_v29 = vadd.f32 %v394_v22, %v342_v57  ;;  %v2247_v19 = vmax.f32 %v993_v28, 0.0  ;;  %v1766_v24 = vstv %s1700_s14 }
  0xa6   :  { %v224_v4 = vmul.f32 %v1743_v50, %v2245_v10  ;;  %v284_v30 = vmul.f32 %v1746_v6, %v2246_v48  ;;  %v574_v22 = vmul.f32 %v1069_v56, %v2181_v44  ;;  %v2179_v1 = vmax.f32 %v1740_v2, 0.0  ;;  %v2263_v44 = vld [vmem:[#allocation14_spill] sm:$0xff] }
  0xa7   :  { %v344_v60 = vmul.f32 %v1760_v37, %v2247_v19  ;;  %v462_v45 = vadd.f32 %v454_v49, %v402_v29  ;;  %v1773_v27 = vstv %s1706_s15  ;;  %v2248_v47 = vmax.f32 %v1008_v33, 0.0  ;;  %v2254_v19 = vld [vmem:[#allocation17_spill] sm:$0xff] }
  0xa8   :  { %v232_v54 = vadd.f32 %v224_v4, %v172_v25  ;;  %v1779_v18 = vstv %s1716_s16  ;;  %v634_v49 = vmul.f32 %v1075_v58, %v2180_v63  ;;  %v2249_v25 = vmax.f32 %v1011_v34, 0.0  ;;  %v2250_v4 = vld [vmem:[#allocation16_spill] sm:$0xff]  ;;  %v2260_v63 = vld [vmem:[#allocation19_spill] sm:$0xff] }
  0xa9   :  { %v404_v38 = vmul.f32 %v1766_v24, %v2248_v47  ;;  %v522_v28 = vadd.f32 %v514_v23, %v462_v45  ;;  %v1788_v10 = vstv %s1728_s17  ;;  %v2251_v29 = vmax.f32 %v2250_v4, 0.0 }
  0xaa   :  { %v292_v46 = vadd.f32 %v284_v30, %v232_v54  ;;  %v464_v56 = vmul.f32 %v1773_v27, %v2249_v25  ;;  %v694_v23 = vmul.f32 %v1095_v7, %v2179_v1  ;;  %v2252_v30 = vld [vmem:[#allocation12_spill] sm:$0xff]  ;;  %v2256_v25 = vld [vmem:[#allocation18_spill] sm:$0xff]  ;;  %v1811_v1 = vstv %s782_s21 }
  0xab   :  { %v164_v33 = vmul.f32 %v1722_v20, %v2251_v29  ;;  %v582_v48 = vadd.f32 %v574_v22, %v522_v28  ;;  %v2253_v54 = vmax.f32 %v2252_v30, 0.0  ;;  %v2257_v4 = vmax.f32 %v2256_v25, 0.0  ;;  %v2258_v29 = vld [vmem:[#allocation13_spill] sm:$0xff] }
  0xac   :  { %v352_v57 = vadd.f32 %v344_v60, %v292_v46  ;;  %v2255_v60 = vmax.f32 %v2254_v19, 0.0  ;;  %v1802_v46 = vstv %s780_s20  ;;  %v2259_v7 = vmax.f32 %v2258_v29, 0.0 }
  0xad   :  { %v524_v58 = vmul.f32 %v1779_v18, %v2253_v54  ;;  %v173_v47 = vadd.f32 %v1734_v41, %v164_v33  ;;  %v285_v22 = vmul.f32 %v1746_v6, %v2257_v4  ;;  %v642_v28 = vadd.f32 %v634_v49, %v582_v48 }
  0xae   :  { %v225_v34 = vmul.f32 %v1743_v50, %v2255_v60  ;;  %v412_v45 = vadd.f32 %v404_v38, %v352_v57  ;;  %v584_v30 = vmul.f32 %v1788_v10, %v2259_v7  ;;  %v2261_v60 = vmax.f32 %v2260_v63, 0.0 }
  0xaf   :  { %v2262_v57 = vmax.f32 %v1192_v51, 0.0  ;;  %v702_v25 = vadd.f32 %v694_v23, %v642_v28  ;;  %v2264_v4 = vmax.f32 %v2263_v44, 0.0  ;;  %v2265_v48 = vmax.f32 %v1133_v16, 0.0  ;;  %v2267_v51 = vld [vmem:[#allocation25_spill] sm:$0xff]  ;;  %v2269_v44 = vld [vmem:[#allocation15_spill] sm:$0xff] }
  0xb0   :  { %v472_v54 = vadd.f32 %v464_v56, %v412_v45  ;;  %v233_v19 = vadd.f32 %v225_v34, %v173_v47  ;;  %v345_v38 = vmul.f32 %v1760_v37, %v2261_v60  ;;  %v2266_v56 = vmax.f32 %v1201_v35, 0.0  ;;  %v2271_v60 = vld [vmem:[#allocation20_spill] sm:$0xff] }
  0xb1   :  { %v165_v33 = vmul.f32 %v1722_v20, %v2262_v57  ;;  %v644_v49 = vmul.f32 %v1802_v46, %v2264_v4  ;;  %v405_v29 = vmul.f32 %v1766_v24, %v2265_v48  ;;  %v2268_v7 = vmax.f32 %v2267_v51, 0.0  ;;  %727 = vst [vmem:[%s2058_s5 + $0x38] sm:$0xff] %v702_v25  ;;  %v2277_v25 = vld [vmem:[#allocation26_spill] sm:$0xff] }
  0xb2   :  { %v226_v34 = vmul.f32 %v1743_v50, %v2266_v56  ;;  %v532_v63 = vadd.f32 %v524_v58, %v472_v54  ;;  %v293_v45 = vadd.f32 %v285_v22, %v233_v19  ;;  %v2270_v16 = vmax.f32 %v2269_v44, 0.0  ;;  %v2273_v58 = vld [vmem:[#allocation21_spill] sm:$0xff]  ;;  %v2275_v19 = vld [vmem:[#allocation22_spill] sm:$0xff] }
  0xb3   :  { %v174_v47 = vadd.f32 %v1734_v41, %v165_v33  ;;  %v286_v23 = vmul.f32 %v1746_v6, %v2268_v7  ;;  %v2272_v35 = vmax.f32 %v2271_v60, 0.0  ;;  %v2274_v22 = vmax.f32 %v2273_v58, 0.0 }
  0xb4   :  { %v704_v28 = vmul.f32 %v1811_v1, %v2270_v16  ;;  %v2276_v33 = vmax.f32 %v2275_v19, 0.0  ;;  %v592_v48 = vadd.f32 %v584_v30, %v532_v63  ;;  %v353_v56 = vadd.f32 %v345_v38, %v293_v45  ;;  %v2279_v16 = vld [vmem:[#allocation23_spill] sm:$0xff] }
  0xb5   :  { %v465_v57 = vmul.f32 %v1773_v27, %v2272_v35  ;;  %v525_v54 = vmul.f32 %v1779_v18, %v2274_v22  ;;  %v234_v51 = vadd.f32 %v226_v34, %v174_v47  ;;  %v2278_v7 = vmax.f32 %v2277_v25, 0.0  ;;  %v2281_v35 = vld [vmem:[#allocation24_spill] sm:$0xff]  ;;  %v2283_v22 = vld [vmem:[#allocation33_spill] sm:$0xff]  ;;  %v2287_v47 = vld [vmem:[#allocation27_spill] sm:$0xff] }
  0xb6   :  { %v585_v4 = vmul.f32 %v1788_v10, %v2276_v33  ;;  %v2280_v21 = vmax.f32 %v2279_v16, 0.0  ;;  %v2282_v52 = vmax.f32 %v2281_v35, 0.0  ;;  %v2284_v62 = vmax.f32 %v2283_v22, 0.0  ;;  %v2285_v33 = vld [vmem:[#allocation34_spill] sm:$0xff] }
  0xb7   :  { %v346_v44 = vmul.f32 %v1760_v37, %v2278_v7  ;;  %v2286_v30 = vmax.f32 %v2285_v33, 0.0  ;;  %v652_v34 = vadd.f32 %v644_v49, %v592_v48  ;;  %v413_v63 = vadd.f32 %v405_v29, %v353_v56  ;;  %v2293_v33 = vld [vmem:[#allocation35_spill] sm:$0xff]  ;;  %v2295_v56 = vld [vmem:[#allocation30_spill] sm:$0xff] }
  0xb8   :  { %v645_v60 = vmul.f32 %v1802_v46, %v2280_v21  ;;  %v705_v58 = vmul.f32 %v1811_v1, %v2282_v52  ;;  %v166_v19 = vmul.f32 %v1722_v20, %v2284_v62  ;;  %v294_v45 = vadd.f32 %v286_v23, %v234_v51  ;;  %v2289_v21 = vld [vmem:[#allocation28_spill] sm:$0xff]  ;;  %v2291_v52 = vld [vmem:[#allocation29_spill] sm:$0xff] }
  0xb9   :  { %v227_v38 = vmul.f32 %v1743_v50, %v2286_v30  ;;  %v2288_v25 = vmax.f32 %v2287_v47, 0.0  ;;  %v2290_v16 = vmax.f32 %v2289_v21, 0.0  ;;  %v2292_v40 = vmax.f32 %v2291_v52, 0.0  ;;  %v2299_v52 = vld [vmem:[#allocation43_spill] sm:$0xff] }
  0xba   :  { %v175_v62 = vadd.f32 %v1734_v41, %v166_v19  ;;  %v2294_v8 = vmax.f32 %v2293_v33, 0.0  ;;  %v712_v29 = vadd.f32 %v704_v28, %v652_v34  ;;  %v473_v23 = vadd.f32 %v465_v57, %v413_v63  ;;  %v2305_v63 = vld [vmem:[#allocation32_spill] sm:$0xff] }
  0xbb   :  { %v406_v7 = vmul.f32 %v1766_v24, %v2288_v25  ;;  %v466_v35 = vmul.f32 %v1773_v27, %v2290_v16  ;;  %v526_v22 = vmul.f32 %v1779_v18, %v2292_v40  ;;  %v354_v48 = vadd.f32 %v346_v44, %v294_v45  ;;  %v2297_v25 = vld [vmem:[#allocation36_spill] sm:$0xff]  ;;  %v2303_v44 = vld [vmem:[#allocation31_spill] sm:$0xff] }
  0xbc   :  { %v287_v49 = vmul.f32 %v1746_v6, %v2294_v8  ;;  %v2296_v51 = vmax.f32 %v2295_v56, 0.0  ;;  %v235_v47 = vadd.f32 %v227_v38, %v175_v62  ;;  %v2298_v21 = vmax.f32 %v2297_v25, 0.0  ;;  %784 = vst [vmem:[%s2058_s5 + $0x40] sm:$0xff] %v712_v29 }
  0xbd   :  { %v2300_v40 = vmax.f32 %v2299_v52, 0.0  ;;  %v2302_v33 = vmax.f32 %v2301_v36, 0.0  ;;  %v533_v28 = vadd.f32 %v525_v54, %v473_v23  ;;  %v414_v57 = vadd.f32 %v406_v7, %v354_v48  ;;  %v2309_v52 = vld [vmem:[#allocation45_spill] sm:$0xff]  ;;  %v2311_v23 = vld [vmem:[#allocation38_spill] sm:$0xff] }
  0xbe   :  { %v586_v30 = vmul.f32 %v1788_v10, %v2296_v51  ;;  %v347_v16 = vmul.f32 %v1760_v37, %v2298_v21  ;;  %v2304_v38 = vmax.f32 %v2303_v44, 0.0  ;;  %v2306_v45 = vmax.f32 %v2305_v63, 0.0  ;;  %v2307_v51 = vld [vmem:[#allocation37_spill] sm:$0xff]  ;;  %v2313_v44 = vld [vmem:[#allocation39_spill] sm:$0xff]  ;;  %v2315_v63 = vld [vmem:[#allocation40_spill] sm:$0xff] }
  0xbf   :  { %v167_v19 = vmul.f32 %v1722_v20, %v2300_v40  ;;  %v228_v8 = vmul.f32 %v1743_v50, %v2302_v33  ;;  %v295_v56 = vadd.f32 %v287_v49, %v235_v47  ;;  %v2308_v25 = vmax.f32 %v2307_v51, 0.0 }
  0xc0   :  { %v646_v34 = vmul.f32 %v1802_v46, %v2304_v38  ;;  %v706_v62 = vmul.f32 %v1811_v1, %v2306_v45  ;;  %v2310_v40 = vmax.f32 %v2309_v52, 0.0  ;;  %v593_v7 = vadd.f32 %v585_v4, %v533_v28  ;;  %v2319_v28 = vld [vmem:[#allocation53_spill] sm:$0xff] }
  0xc1   :  { %v407_v36 = vmul.f32 %v1766_v24, %v2308_v25  ;;  %v176_v21 = vadd.f32 %v1734_v41, %v167_v19  ;;  %v474_v29 = vadd.f32 %v466_v35, %v414_v57  ;;  %v2312_v48 = vmax.f32 %v2311_v23, 0.0  ;;  %v2317_v25 = vld [vmem:[#allocation46_spill] sm:$0xff] }
  0xc2   :  { %v288_v54 = vmul.f32 %v1746_v6, %v2310_v40  ;;  %v2314_v38 = vmax.f32 %v2313_v44, 0.0  ;;  %v355_v47 = vadd.f32 %v347_v16, %v295_v56  ;;  %v2316_v45 = vmax.f32 %v2315_v63, 0.0  ;;  %v2323_v56 = vld [vmem:[#allocation41_spill] sm:$0xff] }
  0xc3   :  { %v467_v33 = vmul.f32 %v1773_v27, %v2312_v48  ;;  %v236_v19 = vadd.f32 %v228_v8, %v176_v21  ;;  %v2318_v52 = vmax.f32 %v2317_v25, 0.0  ;;  %v653_v4 = vadd.f32 %v645_v60, %v593_v7  ;;  %v2321_v48 = vld [vmem:[#allocation54_spill] sm:$0xff]  ;;  %v2325_v21 = vld [vmem:[#allocation47_spill] sm:$0xff] }
  0xc4   :  { %v527_v49 = vmul.f32 %v1779_v18, %v2314_v38  ;;  %v587_v51 = vmul.f32 %v1788_v10, %v2316_v45  ;;  %v534_v35 = vadd.f32 %v526_v22, %v474_v29  ;;  %v2320_v57 = vmax.f32 %v2319_v28, 0.0  ;;  %v2327_v29 = vld [vmem:[#allocation55_spill] sm:$0xff] }
  0xc5   :  { %v348_v40 = vmul.f32 %v1760_v37, %v2318_v52  ;;  %v2322_v44 = vmax.f32 %v2321_v48, 0.0  ;;  %v415_v16 = vadd.f32 %v407_v36, %v355_v47  ;;  %v2324_v63 = vmax.f32 %v2323_v56, 0.0 }
  0xc6   :  { %v168_v23 = vmul.f32 %v1722_v20, %v2320_v57  ;;  %v296_v8 = vadd.f32 %v288_v54, %v236_v19  ;;  %v2326_v25 = vmax.f32 %v2325_v21, 0.0  ;;  %v713_v60 = vadd.f32 %v705_v58, %v653_v4 }
  0xc7   :  { %v229_v38 = vmul.f32 %v1743_v50, %v2322_v44  ;;  %v647_v45 = vmul.f32 %v1802_v46, %v2324_v63  ;;  %v594_v22 = vadd.f32 %v586_v30, %v534_v35  ;;  %v2328_v28 = vmax.f32 %v2327_v29, 0.0  ;;  %v2329_v44 = vld [vmem:[#allocation42_spill] sm:$0xff]  ;;  %v2331_v63 = vld [vmem:[#allocation48_spill] sm:$0xff]  ;;  %v2333_v30 = vld [vmem:[#allocation49_spill] sm:$0xff] }
  0xc8   :  { %v408_v52 = vmul.f32 %v1766_v24, %v2326_v25  ;;  %v177_v7 = vadd.f32 %v1734_v41, %v168_v23  ;;  %v475_v48 = vadd.f32 %v467_v33, %v415_v16  ;;  %v2330_v36 = vmax.f32 %v2329_v44, 0.0  ;;  %785 = vst [vmem:[%s2058_s5 + $0x48] sm:$0xff] %v713_v60  ;;  %v2335_v33 = vld [vmem:[#allocation56_spill] sm:$0xff] }
  0xc9   :  { %v289_v57 = vmul.f32 %v1746_v6, %v2328_v28  ;;  %v356_v56 = vadd.f32 %v348_v40, %v296_v8  ;;  %v2332_v54 = vmax.f32 %v2331_v63, 0.0  ;;  %v654_v58 = vadd.f32 %v646_v34, %v594_v22  ;;  %v2337_v8 = vld [vmem:[#allocation50_spill] sm:$0xff] }
  0xca   :  { %v707_v47 = vmul.f32 %v1811_v1, %v2330_v36  ;;  %v2334_v4 = vmax.f32 %v2333_v30, 0.0  ;;  %v237_v23 = vadd.f32 %v229_v38, %v177_v7  ;;  %v2336_v16 = vmax.f32 %v2335_v33, 0.0  ;;  %v2340_v36 = vld [vmem:[#allocation57_spill] sm:$0xff]  ;;  %v2342_v7 = vld [vmem:[#allocation63_spill] sm:$0xff] }
  0xcb   :  { %v468_v19 = vmul.f32 %v1773_v27, %v2332_v54  ;;  %v535_v25 = vadd.f32 %v527_v49, %v475_v48  ;;  %v416_v40 = vadd.f32 %v408_v52, %v356_v56  ;;  %v2338_v29 = vmax.f32 %v2337_v8, 0.0  ;;  %v2344_v56 = vld [vmem:[#allocation64_spill] sm:$0xff] }
  0xcc   :  { %v528_v35 = vmul.f32 %v1779_v18, %v2334_v4  ;;  %v349_v21 = vmul.f32 %v1760_v37, %v2336_v16  ;;  %v2339_v44 = vmax.f32 %v1546_v55, 0.0  ;;  %v714_v34 = vadd.f32 %v706_v62, %v654_v58  ;;  %v2346_v62 = vld [vmem:[#allocation51_spill] sm:$0xff] }
  0xcd   :  { %v588_v28 = vmul.f32 %v1788_v10, %v2338_v29  ;;  %v297_v22 = vadd.f32 %v289_v57, %v237_v23  ;;  %v2341_v63 = vmax.f32 %v2340_v36, 0.0  ;;  %v2343_v54 = vmax.f32 %v2342_v7, 0.0  ;;  %v2348_v23 = vld [vmem:[#allocation52_spill] sm:$0xff]  ;;  %v2354_v7 = vld [vmem:[#allocation59_spill] sm:$0xff] }
  0xce   :  { %v169_v60 = vmul.f32 %v1722_v20, %v2339_v44  ;;  %v595_v49 = vadd.f32 %v587_v51, %v535_v25  ;;  %v476_v52 = vadd.f32 %v468_v19, %v416_v40  ;;  %v2345_v4 = vmax.f32 %v2344_v56, 0.0  ;;  %786 = vst [vmem:[%s2058_s5 + $0x50] sm:$0xff] %v714_v34  ;;  %v2350_v19 = vld [vmem:[#allocation58_spill] sm:$0xff] }
  0xcf   :  { %v409_v38 = vmul.f32 %v1766_v24, %v2341_v63  ;;  %v230_v30 = vmul.f32 %v1743_v50, %v2343_v54  ;;  %v2347_v57 = vmax.f32 %v2346_v62, 0.0  ;;  %v2349_v33 = vmax.f32 %v2348_v23, 0.0 }
  0xd0   :  { %v178_v48 = vadd.f32 %v1734_v41, %v169_v60  ;;  %v290_v55 = vmul.f32 %v1746_v6, %v2345_v4  ;;  %v357_v51 = vadd.f32 %v349_v21, %v297_v22  ;;  %v2351_v25 = vmax.f32 %v2350_v19, 0.0  ;;  %v2352_v60 = vld [vmem:[#allocation65_spill] sm:$0xff] }
  0xd1   :  { %v648_v58 = vmul.f32 %v1802_v46, %v2347_v57  ;;  %v708_v16 = vmul.f32 %v1811_v1, %v2349_v33  ;;  %v655_v8 = vadd.f32 %v647_v45, %v595_v49  ;;  %v536_v29 = vadd.f32 %v528_v35, %v476_v52  ;;  %v2357_v52 = vld [vmem:[#allocation60_spill] sm:$0xff]  ;;  %v2363_v33 = vld [vmem:[#allocation62_spill] sm:$0xff] }
  0xd2   :  { %v469_v40 = vmul.f32 %v1773_v27, %v2351_v25  ;;  %v238_v44 = vadd.f32 %v230_v30, %v178_v48  ;;  %v2353_v36 = vmax.f32 %v2352_v60, 0.0  ;;  %v417_v63 = vadd.f32 %v409_v38, %v357_v51 }
  0xd3   :  { %v2355_v54 = vmax.f32 %v2354_v7, 0.0  ;;  %v2356_v4 = vmax.f32 %v1588_v15, 0.0  ;;  %v170_v22 = vmul.f32 %v1722_v20, %v143_v5  ;;  %v715_v45 = vadd.f32 %v707_v47, %v655_v8 }
  0xd4   :  { %v350_v34 = vmul.f32 %v1760_v37, %v2353_v36  ;;  %v596_v35 = vadd.f32 %v588_v28, %v536_v29  ;;  %v298_v30 = vadd.f32 %v290_v55, %v238_v44  ;;  %v231_v49 = vmul.f32 %v1743_v50, %v205_v42  ;;  %v2361_v28 = vld [vmem:[#allocation61_spill] sm:$0xff] }
  0xd5   :  { %v529_v56 = vmul.f32 %v1779_v18, %v2355_v54  ;;  %v410_v21 = vmul.f32 %v1766_v24, %v2356_v4  ;;  %v477_v38 = vadd.f32 %v469_v40, %v417_v63  ;;  %v2358_v48 = vmax.f32 %v2357_v52, 0.0  ;;  %787 = vst [vmem:[%s2058_s5 + $0x58] sm:$0xff] %v715_v45 }
  0xd6   :  { %v179_v15 = vadd.f32 %v1734_v41, %v170_v22  ;;  %v291_v59 = vmul.f32 %v1746_v6, %v265_v9  ;;  %v656_v5 = vadd.f32 %v648_v58, %v596_v35  ;;  %v358_v20 = vadd.f32 %v350_v34, %v298_v30 }
  0xd7   :  { %v589_v62 = vmul.f32 %v1788_v10, %v2358_v48  ;;  %v2360_v47 = vmax.f32 %v2359_v11, 0.0  ;;  %v537_v50 = vadd.f32 %v529_v56, %v477_v38  ;;  %v2362_v55 = vmax.f32 %v2361_v28, 0.0 }
  0xd8   :  { %v239_v41 = vadd.f32 %v231_v49, %v179_v15  ;;  %v351_v53 = vmul.f32 %v1760_v37, %v325_v13  ;;  %v716_v9 = vadd.f32 %v708_v16, %v656_v5  ;;  %v418_v6 = vadd.f32 %v410_v21, %v358_v20 }
  0xd9   :  { %v470_v42 = vmul.f32 %v1773_v27, %v2360_v47  ;;  %v649_v57 = vmul.f32 %v1802_v46, %v2362_v55  ;;  %v530_v58 = vmul.f32 %v1779_v18, %v504_v0  ;;  %v597_v23 = vadd.f32 %v589_v62, %v537_v50 }
  0xda   :  { %v2364_v51 = vmax.f32 %v2363_v33, 0.0  ;;  %v299_v25 = vadd.f32 %v291_v59, %v239_v41  ;;  %v2365_v40 = vmax.f32 %v1675_v3, 0.0  ;;  %788 = vst [vmem:[%s2058_s5 + $0x60] sm:$0xff] %v716_v9  ;;  %v2366_v13 = vmax.f32 %v1616_v12, 0.0 }
  0xdb   :  { %v478_v31 = vadd.f32 %v470_v42, %v418_v6  ;;  %v657_v0 = vadd.f32 %v649_v57, %v597_v23  ;;  %v2367_v16 = vmax.f32 %v1686_v26, 0.0  ;;  %v2368_v3 = vmax.f32 %v1622_v32, 0.0 }
  0xdc   :  { %v709_v19 = vmul.f32 %v1811_v1, %v2364_v51  ;;  %v411_v8 = vmul.f32 %v1766_v24, %v2365_v40  ;;  %v590_v43 = vmul.f32 %v1788_v10, %v2366_v13  ;;  %v359_v37 = vadd.f32 %v351_v53, %v299_v25 }
  0xdd   :  { %v471_v29 = vmul.f32 %v1773_v27, %v2367_v16  ;;  %v538_v44 = vadd.f32 %v530_v58, %v478_v31  ;;  %v650_v24 = vmul.f32 %v1802_v46, %v2368_v3  ;;  %v2369_v34 = vmax.f32 %v1689_v39, 0.0 }
  0xde   :  { %v717_v60 = vadd.f32 %v709_v19, %v657_v0  ;;  %v419_v36 = vadd.f32 %v411_v8, %v359_v37  ;;  %v2370_v7 = vmax.f32 %v1625_v61, 0.0  ;;  %v2371_v32 = vmax.f32 %v1713_v14, 0.0 }
  0xdf   :  { %v531_v63 = vmul.f32 %v1779_v18, %v2369_v34  ;;  %v598_v12 = vadd.f32 %v590_v43, %v538_v44  ;;  %v2372_v39 = vmax.f32 %v1719_v17, 0.0  ;;  %v2373_v61 = vmax.f32 %v1740_v2, 0.0 }
  0xe0   :  { %v710_v54 = vmul.f32 %v1811_v1, %v2370_v7  ;;  %789 = vst [vmem:[%s2058_s5 + $0x68] sm:$0xff] %v717_v60  ;;  %v479_v26 = vadd.f32 %v471_v29, %v419_v36  ;;  %v591_v27 = vmul.f32 %v1788_v10, %v2371_v32 }
  0xe1   :  { %v658_v56 = vadd.f32 %v650_v24, %v598_v12  ;;  %v651_v18 = vmul.f32 %v1802_v46, %v2372_v39  ;;  %v711_v45 = vmul.f32 %v1811_v1, %v2373_v61 }
  0xe2   :  { %v539_v4 = vadd.f32 %v531_v63, %v479_v26 }
  0xe3   :  { %v718_v21 = vadd.f32 %v710_v54, %v658_v56 }
  0xe4   :  { %v599_v22 = vadd.f32 %v591_v27, %v539_v4 }
  0xe5   :  { %790 = vst [vmem:[%s2058_s5 + $0x70] sm:$0xff] %v718_v21 }
  0xe6   :  { %v659_v35 = vadd.f32 %v651_v18, %v599_v22 }
  0xe8   :  { %v719_v14 = vadd.f32 %v711_v45, %v659_v35 }
  0xea   :  { %791 = vst [vmem:[%s2058_s5 + $0x78] sm:$0xff] %v719_v14 }
  0xeb   :  { %742 = vsyncpa [#allocation3], 1 }
  0xec   :  { %743 = vsyncpa [#allocation5], 1 }
  0xed   :  { %744 = vsyncpa [#allocation8], 1 }

</bundles_post_ra>
